<compile_context>
chip_gen: v6e
topology: v6e:2x2x1
jax: 0.10.0
libtpu: 0.0.40
codegen_flags: <defaults>
</compile_context>

<pallas_src>
import functools

import jax
import jax.numpy as jnp
from jax import lax
from jax.experimental import pallas as pl
from jax.experimental.pallas import tpu as pltpu

# Switch to lax.Precision.DEFAULT (and match the reference) when C grows; at
# C=4 the MXU is idle either way and HIGHEST keeps the tightest accuracy.
MATMUL_PRECISION = lax.Precision.HIGHEST


def _residual_block_kernel(x_ref, w1_ref, b1_ref, w2_ref, b2_ref, o_ref,
                           pad_ref, col_ref, *, H, W, NB):
    """One block of NB batch images per grid step.

    x_ref   : (NB, C, H*W)          f32  dense NCHW input (free reshape of (C,H,W))
    w1_ref  : (C, 9*C)              f32  conv1 weights, col = (ky*3+kx)*C + c_in
    b1_ref  : (C, 1)                f32
    w2_ref  : (C, 9*C)              f32
    b2_ref  : (C, 1)                f32
    o_ref   : (NB, C, H*W)          f32  dense output (256 lanes, unmasked stores)
    pad_ref : (NB, C, 2*(W+2)+H*W)  f32  scratch: dense image with zero margins
    col_ref : (9*C, NB*H*W)         f32  scratch: im2col column matrix (reused)
    """
    C = x_ref.shape[1]
    L = H * W
    M = W + 2                       # zero margin >= max |tap shift| = W + 1

    # Column-validity masks (c = flat_pos % W), trace-time-constant patterns.
    # Row validity needs no mask: row-out-of-range taps land inside the zero
    # margins of pad_ref (|shift| <= W+1 < M) and read zeros.
    cidx = lax.broadcasted_iota(jnp.int32, (C, L), 1) % W
    mask_l = cidx >= 1              # tap dx = -1 is valid (source col c-1 >= 0)
    mask_r = cidx <= (W - 2)        # tap dx = +1 is valid (source col c+1 <= W-1)

    # Zero only the margins each step; the interior is fully overwritten below
    # (the margins are shared by the x pass and the h1 pass).
    pad_ref[:, :, :M] = jnp.zeros((NB, C, M), jnp.float32)
    pad_ref[:, :, M + L:] = jnp.zeros((NB, C, M), jnp.float32)

    def build_cols(nb):
        # im2col on the dense stride-W layout: tap (dy, dx) of output position
        # p is the lane-slice shifted by dy*W + dx; positions whose source
        # column wraps across a row boundary are masked to zero.
        t = 0
        for dy in (-1, 0, 1):
            for dx in (-1, 0, 1):
                s = dy * W + dx
                tap = pad_ref[nb, :, M + s:M + s + L]          # (C, L)
                if dx == -1:
                    tap = jnp.where(mask_l, tap, 0.0)
                elif dx == 1:
                    tap = jnp.where(mask_r, tap, 0.0)
                col_ref[t * C:(t + 1) * C, nb * L:(nb + 1) * L] = tap
                t += 1

    def conv(w_ref, b_ref):
        # Whole 3x3 conv for all NB images: one (C, 9C) @ (9C, NB*L) matmul.
        acc = jnp.dot(w_ref[...], col_ref[...],
                      preferred_element_type=jnp.float32,
                      precision=MATMUL_PRECISION)
        return acc + b_ref[...]                                # bias added once

    # conv1 -> ReLU.
    for nb in range(NB):
        pad_ref[nb, :, M:M + L] = x_ref[nb]
        build_cols(nb)
    h1 = jnp.maximum(conv(w1_ref, b1_ref), 0.0)                # (C, NB*L)

    # conv2 (reuse the same margin scratch; x taps were already consumed and
    # the residual reads x from the input block, not the scratch).
    for nb in range(NB):
        pad_ref[nb, :, M:M + L] = h1[:, nb * L:(nb + 1) * L]
        build_cols(nb)
    out2 = conv(w2_ref, b2_ref)                                # (C, NB*L)

    # Residual add + ReLU; dense 256-lane unmasked stores.
    for nb in range(NB):
        o_ref[nb] = jnp.maximum(out2[:, nb * L:(nb + 1) * L] + x_ref[nb], 0.0)


def residual_block(x_nchw, w1_oihw, b1, w2_oihw, b2, *, max_nb=16):
    """PyTorch-compatible wrapper. x: (N,C,H,W); weights OIHW; biases (C,)."""
    N, C, H, W = x_nchw.shape
    L = H * W

    x_flat = x_nchw.reshape(N, C, L).astype(jnp.float32)       # free reshape

    # OIHW -> (C_out, ky, kx, C_in) -> (C_out, 9*C_in): column order matches
    # the im2col row order (tap-major, input channel within tap).
    w1m = jnp.transpose(w1_oihw, (0, 2, 3, 1)).reshape(C, 9 * C).astype(jnp.float32)
    w2m = jnp.transpose(w2_oihw, (0, 2, 3, 1)).reshape(C, 9 * C).astype(jnp.float32)
    b1c = b1.reshape(C, 1).astype(jnp.float32)
    b2c = b2.reshape(C, 1).astype(jnp.float32)

    # NB images per grid step amortize per-step grid/DMA overhead and grow the
    # matmul N dim, but keep grid length >= 2 so the "parallel" batch axis can
    # still split across both TensorCores on v7x.
    target = min(max_nb, N // 2) if N >= 2 else 1
    NB = max(d for d in range(1, target + 1) if N % d == 0)
    G = N // NB

    kernel = functools.partial(_residual_block_kernel, H=H, W=W, NB=NB)

    cost = pl.CostEstimate(
        flops=4 * N * L * 9 * C * C,                           # two 3x3 convs
        transcendentals=0,
        bytes_accessed=4 * (2 * N * C * L + 2 * 9 * C * C + 2 * C),
    )

    out = pl.pallas_call(
        kernel,
        out_shape=jax.ShapeDtypeStruct((N, C, L), jnp.float32),
        grid=(G,),
        in_specs=[
            pl.BlockSpec((NB, C, L), lambda g: (g, 0, 0)),     # x (NB per step)
            pl.BlockSpec((C, 9 * C), lambda g: (0, 0)),        # w1 (resident)
            pl.BlockSpec((C, 1), lambda g: (0, 0)),            # b1
            pl.BlockSpec((C, 9 * C), lambda g: (0, 0)),        # w2
            pl.BlockSpec((C, 1), lambda g: (0, 0)),            # b2
        ],
        out_specs=pl.BlockSpec((NB, C, L), lambda g: (g, 0, 0)),
        scratch_shapes=[
            pltpu.VMEM((NB, C, L + 2 * (W + 2)), jnp.float32),  # zero-margined image
            pltpu.VMEM((9 * C, NB * L), jnp.float32),           # im2col columns
        ],
        compiler_params=pltpu.CompilerParams(
            dimension_semantics=("parallel",),                  # batch across cores
            vmem_limit_bytes=32 * 1024 * 1024,
        ),
        cost_estimate=cost,
    )(x_flat, w1m, b1c, w2m, b2c)

    # Dense (C, H*W) layout -> (N, C, H, W) is a free reshape: no crop, no
    # transpose, no extra HBM pass.
    return out.reshape(N, C, H, W)


def residual_block_ref(x, w1, b1, w2, b2):
    """Pure-JAX reference matching the PyTorch forward (full-f32 precision)."""
    dn = lax.conv_dimension_numbers(x.shape, w1.shape, ("NCHW", "OIHW", "NCHW"))
    c1 = lax.conv_general_dilated(x, w1, (1, 1), "SAME", dimension_numbers=dn,
                                  precision=lax.Precision.HIGHEST)
    h = jnp.maximum(c1 + b1[None, :, None, None], 0.0)
    c2 = lax.conv_general_dilated(h, w2, (1, 1), "SAME", dimension_numbers=dn,
                                  precision=lax.Precision.HIGHEST)
    return jnp.maximum(c2 + b2[None, :, None, None] + x, 0.0)


if __name__ == "__main__":
    key = jax.random.PRNGKey(0)
    N, C, H, W = 2, 4, 16, 16
    k1, k2, k3, k4, k5 = jax.random.split(key, 5)

    x = jax.random.normal(k1, (N, C, H, W), jnp.float32)

    # Deterministic PyTorch-style init: U(-1/sqrt(fan_in), 1/sqrt(fan_in))
    fan_in = C * 3 * 3
    bound = 1.0 / (fan_in ** 0.5)
    w1 = jax.random.uniform(k2, (C, C, 3, 3), jnp.float32, -bound, bound)
    b1 = jax.random.uniform(k3, (C,), jnp.float32, -bound, bound)
    w2 = jax.random.uniform(k4, (C, C, 3, 3), jnp.float32, -bound, bound)
    b2 = jax.random.uniform(k5, (C,), jnp.float32, -bound, bound)

    out = residual_block(x, w1, b1, w2, b2)
    jax.block_until_ready(out)

    ref = residual_block_ref(x, w1, b1, w2, b2)
    assert out.shape == ref.shape == (N, C, H, W)
    max_err = float(jnp.max(jnp.abs(out - ref)))
    assert jnp.allclose(out, ref, atol=1e-4, rtol=1e-4), f"max_err={max_err}"

    print("KERNEL_OK")
</pallas_src>

<mosaic_0001>
module attributes {stable_mosaic.version = 11 : i64} {
  func.func @_residual_block_kernel(%arg0: i32, %arg1: memref<1x4x256xf32, #tpu.memory_space<vmem>>, %arg2: memref<4x36xf32, #tpu.memory_space<vmem>>, %arg3: memref<4x1xf32, #tpu.memory_space<vmem>>, %arg4: memref<4x36xf32, #tpu.memory_space<vmem>>, %arg5: memref<4x1xf32, #tpu.memory_space<vmem>>, %arg6: memref<1x4x256xf32, #tpu.memory_space<vmem>>, %arg7: memref<1x4x292xf32, #tpu.memory_space<vmem>>, %arg8: memref<36x256xf32, #tpu.memory_space<vmem>>) attributes {dimension_semantics = [#tpu.dimension_semantics<parallel>], iteration_bounds = array<i64: 2>, scalar_prefetch = 0 : i64, scratch_operands = 2 : i64, tpu.core_type = #tpu.core_type<tc>, window_params = [{transform_indices = @transform_0, window_bounds = array<i64: 1, 4, 256>}, {pipeline_mode = #tpu.pipeline_mode<synchronous>, transform_indices = @transform_1, window_bounds = array<i64: 4, 36>}, {pipeline_mode = #tpu.pipeline_mode<synchronous>, transform_indices = @transform_2, window_bounds = array<i64: 4, 1>}, {pipeline_mode = #tpu.pipeline_mode<synchronous>, transform_indices = @transform_3, window_bounds = array<i64: 4, 36>}, {pipeline_mode = #tpu.pipeline_mode<synchronous>, transform_indices = @transform_4, window_bounds = array<i64: 4, 1>}, {transform_indices = @transform_5, window_bounds = array<i64: 1, 4, 256>}]} {
    %0 = tpu.iota {dimensions = array<i32: 1>} : vector<4x256xi32>
    %c16_i32 = arith.constant 16 : i32
    %c0_i32 = arith.constant 0 : i32
    %1 = arith.cmpi eq, %c16_i32, %c0_i32 : i32
    %c1_i32 = arith.constant 1 : i32
    %2 = arith.select %1, %c1_i32, %c16_i32 : i32
    %3 = vector.broadcast %2 : i32 to vector<4x256xi32>
    %4 = arith.remsi %0, %3 : vector<4x256xi32>
    %c0_i32_0 = arith.constant 0 : i32
    %5 = vector.broadcast %c0_i32_0 : i32 to vector<4x256xi32>
    %6 = arith.cmpi ne, %4, %5 : vector<4x256xi32>
    %c0_i32_1 = arith.constant 0 : i32
    %7 = vector.broadcast %c0_i32_1 : i32 to vector<4x256xi32>
    %8 = arith.cmpi slt, %4, %7 : vector<4x256xi32>
    %c0_i32_2 = arith.constant 0 : i32
    %9 = arith.cmpi slt, %2, %c0_i32_2 : i32
    %10 = vector.broadcast %9 : i1 to vector<4x256xi1>
    %11 = vector.broadcast %10 : vector<4x256xi1> to vector<4x256xi1>
    %12 = arith.xori %8, %11 : vector<4x256xi1>
    %13 = arith.andi %12, %6 : vector<4x256xi1>
    %14 = vector.broadcast %2 : i32 to vector<4x256xi32>
    %15 = arith.addi %4, %14 : vector<4x256xi32>
    %16 = arith.select %13, %15, %4 : vector<4x256xi1>, vector<4x256xi32>
    %c1_i32_3 = arith.constant 1 : i32
    %17 = vector.broadcast %c1_i32_3 : i32 to vector<4x256xi32>
    %18 = arith.cmpi sge, %16, %17 : vector<4x256xi32>
    %c14_i32 = arith.constant 14 : i32
    %19 = vector.broadcast %c14_i32 : i32 to vector<4x256xi32>
    %20 = arith.cmpi sle, %16, %19 : vector<4x256xi32>
    %cst = arith.constant 0.000000e+00 : f32
    %21 = vector.broadcast %cst : f32 to vector<1x4x18xf32>
    %c0 = arith.constant 0 : index
    %c0_4 = arith.constant 0 : index
    %c0_5 = arith.constant 0 : index
    %22 = vector.load %arg7[%c0, %c0_4, %c0_5] : memref<1x4x292xf32, #tpu.memory_space<vmem>>, vector<1x4x18xf32>
    tpu.vector_store %arg7[%c0, %c0_4, %c0_5], %21 {strides = array<i32>} : memref<1x4x292xf32, #tpu.memory_space<vmem>>, vector<1x4x18xf32>,
    %cst_6 = arith.constant 0.000000e+00 : f32
    %23 = vector.broadcast %cst_6 : f32 to vector<1x4x18xf32>
    %c0_7 = arith.constant 0 : index
    %c0_8 = arith.constant 0 : index
    %c274 = arith.constant 274 : index
    %24 = vector.load %arg7[%c0_7, %c0_8, %c274] : memref<1x4x292xf32, #tpu.memory_space<vmem>>, vector<1x4x18xf32>
    tpu.vector_store %arg7[%c0_7, %c0_8, %c274], %23 {strides = array<i32>} : memref<1x4x292xf32, #tpu.memory_space<vmem>>, vector<1x4x18xf32>,
    %c0_9 = arith.constant 0 : index
    %c0_10 = arith.constant 0 : index
    %c0_11 = arith.constant 0 : index
    %25 = vector.load %arg1[%c0_9, %c0_10, %c0_11] : memref<1x4x256xf32, #tpu.memory_space<vmem>>, vector<1x4x256xf32>
    %26 = vector.shape_cast %25 : vector<1x4x256xf32> to vector<4x256xf32>
    %c0_12 = arith.constant 0 : index
    %c0_13 = arith.constant 0 : index
    %c18 = arith.constant 18 : index
    %27 = vector.load %arg7[%c0_12, %c0_13, %c18] : memref<1x4x292xf32, #tpu.memory_space<vmem>>, vector<1x4x256xf32>
    %28 = vector.shape_cast %27 : vector<1x4x256xf32> to vector<4x256xf32>
    %29 = vector.shape_cast %26 : vector<4x256xf32> to vector<1x4x256xf32>
    tpu.vector_store %arg7[%c0_12, %c0_13, %c18], %29 {strides = array<i32>} : memref<1x4x292xf32, #tpu.memory_space<vmem>>, vector<1x4x256xf32>,
    %c0_14 = arith.constant 0 : index
    %c0_15 = arith.constant 0 : index
    %c1 = arith.constant 1 : index
    %30 = vector.load %arg7[%c0_14, %c0_15, %c1] : memref<1x4x292xf32, #tpu.memory_space<vmem>>, vector<1x4x256xf32>
    %31 = vector.shape_cast %30 : vector<1x4x256xf32> to vector<4x256xf32>
    %cst_16 = arith.constant 0.000000e+00 : f32
    %32 = vector.broadcast %cst_16 : f32 to vector<4x256xf32>
    %33 = arith.select %18, %31, %32 : vector<4x256xi1>, vector<4x256xf32>
    %c0_17 = arith.constant 0 : index
    %c0_18 = arith.constant 0 : index
    %34 = vector.load %arg8[%c0_17, %c0_18] : memref<36x256xf32, #tpu.memory_space<vmem>>, vector<4x256xf32>
    tpu.vector_store %arg8[%c0_17, %c0_18], %33 {strides = array<i32>} : memref<36x256xf32, #tpu.memory_space<vmem>>, vector<4x256xf32>,
    %c0_19 = arith.constant 0 : index
    %c0_20 = arith.constant 0 : index
    %c2 = arith.constant 2 : index
    %35 = vector.load %arg7[%c0_19, %c0_20, %c2] : memref<1x4x292xf32, #tpu.memory_space<vmem>>, vector<1x4x256xf32>
    %36 = vector.shape_cast %35 : vector<1x4x256xf32> to vector<4x256xf32>
    %c4 = arith.constant 4 : index
    %c0_21 = arith.constant 0 : index
    %37 = vector.load %arg8[%c4, %c0_21] : memref<36x256xf32, #tpu.memory_space<vmem>>, vector<4x256xf32>
    tpu.vector_store %arg8[%c4, %c0_21], %36 {strides = array<i32>} : memref<36x256xf32, #tpu.memory_space<vmem>>, vector<4x256xf32>,
    %c0_22 = arith.constant 0 : index
    %c0_23 = arith.constant 0 : index
    %c3 = arith.constant 3 : index
    %38 = vector.load %arg7[%c0_22, %c0_23, %c3] : memref<1x4x292xf32, #tpu.memory_space<vmem>>, vector<1x4x256xf32>
    %39 = vector.shape_cast %38 : vector<1x4x256xf32> to vector<4x256xf32>
    %cst_24 = arith.constant 0.000000e+00 : f32
    %40 = vector.broadcast %cst_24 : f32 to vector<4x256xf32>
    %41 = arith.select %20, %39, %40 : vector<4x256xi1>, vector<4x256xf32>
    %c8 = arith.constant 8 : index
    %c0_25 = arith.constant 0 : index
    %42 = vector.load %arg8[%c8, %c0_25] : memref<36x256xf32, #tpu.memory_space<vmem>>, vector<4x256xf32>
    tpu.vector_store %arg8[%c8, %c0_25], %41 {strides = array<i32>} : memref<36x256xf32, #tpu.memory_space<vmem>>, vector<4x256xf32>,
    %c0_26 = arith.constant 0 : index
    %c0_27 = arith.constant 0 : index
    %c17 = arith.constant 17 : index
    %43 = vector.load %arg7[%c0_26, %c0_27, %c17] : memref<1x4x292xf32, #tpu.memory_space<vmem>>, vector<1x4x256xf32>
    %44 = vector.shape_cast %43 : vector<1x4x256xf32> to vector<4x256xf32>
    %cst_28 = arith.constant 0.000000e+00 : f32
    %45 = vector.broadcast %cst_28 : f32 to vector<4x256xf32>
    %46 = arith.select %18, %44, %45 : vector<4x256xi1>, vector<4x256xf32>
    %c12 = arith.constant 12 : index
    %c0_29 = arith.constant 0 : index
    %47 = vector.load %arg8[%c12, %c0_29] : memref<36x256xf32, #tpu.memory_space<vmem>>, vector<4x256xf32>
    tpu.vector_store %arg8[%c12, %c0_29], %46 {strides = array<i32>} : memref<36x256xf32, #tpu.memory_space<vmem>>, vector<4x256xf32>,
    %c0_30 = arith.constant 0 : index
    %c0_31 = arith.constant 0 : index
    %c18_32 = arith.constant 18 : index
    %48 = vector.load %arg7[%c0_30, %c0_31, %c18_32] : memref<1x4x292xf32, #tpu.memory_space<vmem>>, vector<1x4x256xf32>
    %49 = vector.shape_cast %48 : vector<1x4x256xf32> to vector<4x256xf32>
    %c16 = arith.constant 16 : index
    %c0_33 = arith.constant 0 : index
    %50 = vector.load %arg8[%c16, %c0_33] : memref<36x256xf32, #tpu.memory_space<vmem>>, vector<4x256xf32>
    tpu.vector_store %arg8[%c16, %c0_33], %49 {strides = array<i32>} : memref<36x256xf32, #tpu.memory_space<vmem>>, vector<4x256xf32>,
    %c0_34 = arith.constant 0 : index
    %c0_35 = arith.constant 0 : index
    %c19 = arith.constant 19 : index
    %51 = vector.load %arg7[%c0_34, %c0_35, %c19] : memref<1x4x292xf32, #tpu.memory_space<vmem>>, vector<1x4x256xf32>
    %52 = vector.shape_cast %51 : vector<1x4x256xf32> to vector<4x256xf32>
    %cst_36 = arith.constant 0.000000e+00 : f32
    %53 = vector.broadcast %cst_36 : f32 to vector<4x256xf32>
    %54 = arith.select %20, %52, %53 : vector<4x256xi1>, vector<4x256xf32>
    %c20 = arith.constant 20 : index
    %c0_37 = arith.constant 0 : index
    %55 = vector.load %arg8[%c20, %c0_37] : memref<36x256xf32, #tpu.memory_space<vmem>>, vector<4x256xf32>
    tpu.vector_store %arg8[%c20, %c0_37], %54 {strides = array<i32>} : memref<36x256xf32, #tpu.memory_space<vmem>>, vector<4x256xf32>,
    %c0_38 = arith.constant 0 : index
    %c0_39 = arith.constant 0 : index
    %c33 = arith.constant 33 : index
    %56 = vector.load %arg7[%c0_38, %c0_39, %c33] : memref<1x4x292xf32, #tpu.memory_space<vmem>>, vector<1x4x256xf32>
    %57 = vector.shape_cast %56 : vector<1x4x256xf32> to vector<4x256xf32>
    %cst_40 = arith.constant 0.000000e+00 : f32
    %58 = vector.broadcast %cst_40 : f32 to vector<4x256xf32>
    %59 = arith.select %18, %57, %58 : vector<4x256xi1>, vector<4x256xf32>
    %c24 = arith.constant 24 : index
    %c0_41 = arith.constant 0 : index
    %60 = vector.load %arg8[%c24, %c0_41] : memref<36x256xf32, #tpu.memory_space<vmem>>, vector<4x256xf32>
    tpu.vector_store %arg8[%c24, %c0_41], %59 {strides = array<i32>} : memref<36x256xf32, #tpu.memory_space<vmem>>, vector<4x256xf32>,
    %c0_42 = arith.constant 0 : index
    %c0_43 = arith.constant 0 : index
    %c34 = arith.constant 34 : index
    %61 = vector.load %arg7[%c0_42, %c0_43, %c34] : memref<1x4x292xf32, #tpu.memory_space<vmem>>, vector<1x4x256xf32>
    %62 = vector.shape_cast %61 : vector<1x4x256xf32> to vector<4x256xf32>
    %c28 = arith.constant 28 : index
    %c0_44 = arith.constant 0 : index
    %63 = vector.load %arg8[%c28, %c0_44] : memref<36x256xf32, #tpu.memory_space<vmem>>, vector<4x256xf32>
    tpu.vector_store %arg8[%c28, %c0_44], %62 {strides = array<i32>} : memref<36x256xf32, #tpu.memory_space<vmem>>, vector<4x256xf32>,
    %c0_45 = arith.constant 0 : index
    %c0_46 = arith.constant 0 : index
    %c35 = arith.constant 35 : index
    %64 = vector.load %arg7[%c0_45, %c0_46, %c35] : memref<1x4x292xf32, #tpu.memory_space<vmem>>, vector<1x4x256xf32>
    %65 = vector.shape_cast %64 : vector<1x4x256xf32> to vector<4x256xf32>
    %cst_47 = arith.constant 0.000000e+00 : f32
    %66 = vector.broadcast %cst_47 : f32 to vector<4x256xf32>
    %67 = arith.select %20, %65, %66 : vector<4x256xi1>, vector<4x256xf32>
    %c32 = arith.constant 32 : index
    %c0_48 = arith.constant 0 : index
    %68 = vector.load %arg8[%c32, %c0_48] : memref<36x256xf32, #tpu.memory_space<vmem>>, vector<4x256xf32>
    tpu.vector_store %arg8[%c32, %c0_48], %67 {strides = array<i32>} : memref<36x256xf32, #tpu.memory_space<vmem>>, vector<4x256xf32>,
    %c0_49 = arith.constant 0 : index
    %c0_50 = arith.constant 0 : index
    %69 = vector.load %arg2[%c0_49, %c0_50] : memref<4x36xf32, #tpu.memory_space<vmem>>, vector<4x36xf32>
    %c0_51 = arith.constant 0 : index
    %c0_52 = arith.constant 0 : index
    %70 = vector.load %arg8[%c0_51, %c0_52] : memref<36x256xf32, #tpu.memory_space<vmem>>, vector<36x256xf32>
    %cst_53 = arith.constant dense<0.000000e+00> : vector<4x256xf32>
    %71 = tpu.matmul %69, %70, %cst_53 {dimension_numbers = #tpu.dot_dimension_numbers<[1], [0], [0], [1], [0, 0, 1, 1], [], []>, precision = #tpu.contract_precision<fp32>} : vector<4x36xf32>, vector<36x256xf32>, vector<4x256xf32> -> vector<4x256xf32>
    %c0_54 = arith.constant 0 : index
    %c0_55 = arith.constant 0 : index
    %72 = vector.load %arg3[%c0_54, %c0_55] : memref<4x1xf32, #tpu.memory_space<vmem>>, vector<4x1xf32>
    %73 = vector.broadcast %72 : vector<4x1xf32> to vector<4x256xf32>
    %74 = arith.addf %71, %73 : vector<4x256xf32>
    %cst_56 = arith.constant 0.000000e+00 : f32
    %75 = vector.broadcast %cst_56 : f32 to vector<4x256xf32>
    %76 = arith.maximumf %74, %75 : vector<4x256xf32>
    %c0_57 = arith.constant 0 : index
    %c0_58 = arith.constant 0 : index
    %c18_59 = arith.constant 18 : index
    %77 = vector.load %arg7[%c0_57, %c0_58, %c18_59] : memref<1x4x292xf32, #tpu.memory_space<vmem>>, vector<1x4x256xf32>
    %78 = vector.shape_cast %77 : vector<1x4x256xf32> to vector<4x256xf32>
    %79 = vector.shape_cast %76 : vector<4x256xf32> to vector<1x4x256xf32>
    tpu.vector_store %arg7[%c0_57, %c0_58, %c18_59], %79 {strides = array<i32>} : memref<1x4x292xf32, #tpu.memory_space<vmem>>, vector<1x4x256xf32>,
    %c0_60 = arith.constant 0 : index
    %c0_61 = arith.constant 0 : index
    %c1_62 = arith.constant 1 : index
    %80 = vector.load %arg7[%c0_60, %c0_61, %c1_62] : memref<1x4x292xf32, #tpu.memory_space<vmem>>, vector<1x4x256xf32>
    %81 = vector.shape_cast %80 : vector<1x4x256xf32> to vector<4x256xf32>
    %cst_63 = arith.constant 0.000000e+00 : f32
    %82 = vector.broadcast %cst_63 : f32 to vector<4x256xf32>
    %83 = arith.select %18, %81, %82 : vector<4x256xi1>, vector<4x256xf32>
    %c0_64 = arith.constant 0 : index
    %c0_65 = arith.constant 0 : index
    %84 = vector.load %arg8[%c0_64, %c0_65] : memref<36x256xf32, #tpu.memory_space<vmem>>, vector<4x256xf32>
    tpu.vector_store %arg8[%c0_64, %c0_65], %83 {strides = array<i32>} : memref<36x256xf32, #tpu.memory_space<vmem>>, vector<4x256xf32>,
    %c0_66 = arith.constant 0 : index
    %c0_67 = arith.constant 0 : index
    %c2_68 = arith.constant 2 : index
    %85 = vector.load %arg7[%c0_66, %c0_67, %c2_68] : memref<1x4x292xf32, #tpu.memory_space<vmem>>, vector<1x4x256xf32>
    %86 = vector.shape_cast %85 : vector<1x4x256xf32> to vector<4x256xf32>
    %c4_69 = arith.constant 4 : index
    %c0_70 = arith.constant 0 : index
    %87 = vector.load %arg8[%c4_69, %c0_70] : memref<36x256xf32, #tpu.memory_space<vmem>>, vector<4x256xf32>
    tpu.vector_store %arg8[%c4_69, %c0_70], %86 {strides = array<i32>} : memref<36x256xf32, #tpu.memory_space<vmem>>, vector<4x256xf32>,
    %c0_71 = arith.constant 0 : index
    %c0_72 = arith.constant 0 : index
    %c3_73 = arith.constant 3 : index
    %88 = vector.load %arg7[%c0_71, %c0_72, %c3_73] : memref<1x4x292xf32, #tpu.memory_space<vmem>>, vector<1x4x256xf32>
    %89 = vector.shape_cast %88 : vector<1x4x256xf32> to vector<4x256xf32>
    %cst_74 = arith.constant 0.000000e+00 : f32
    %90 = vector.broadcast %cst_74 : f32 to vector<4x256xf32>
    %91 = arith.select %20, %89, %90 : vector<4x256xi1>, vector<4x256xf32>
    %c8_75 = arith.constant 8 : index
    %c0_76 = arith.constant 0 : index
    %92 = vector.load %arg8[%c8_75, %c0_76] : memref<36x256xf32, #tpu.memory_space<vmem>>, vector<4x256xf32>
    tpu.vector_store %arg8[%c8_75, %c0_76], %91 {strides = array<i32>} : memref<36x256xf32, #tpu.memory_space<vmem>>, vector<4x256xf32>,
    %c0_77 = arith.constant 0 : index
    %c0_78 = arith.constant 0 : index
    %c17_79 = arith.constant 17 : index
    %93 = vector.load %arg7[%c0_77, %c0_78, %c17_79] : memref<1x4x292xf32, #tpu.memory_space<vmem>>, vector<1x4x256xf32>
    %94 = vector.shape_cast %93 : vector<1x4x256xf32> to vector<4x256xf32>
    %cst_80 = arith.constant 0.000000e+00 : f32
    %95 = vector.broadcast %cst_80 : f32 to vector<4x256xf32>
    %96 = arith.select %18, %94, %95 : vector<4x256xi1>, vector<4x256xf32>
    %c12_81 = arith.constant 12 : index
    %c0_82 = arith.constant 0 : index
    %97 = vector.load %arg8[%c12_81, %c0_82] : memref<36x256xf32, #tpu.memory_space<vmem>>, vector<4x256xf32>
    tpu.vector_store %arg8[%c12_81, %c0_82], %96 {strides = array<i32>} : memref<36x256xf32, #tpu.memory_space<vmem>>, vector<4x256xf32>,
    %c0_83 = arith.constant 0 : index
    %c0_84 = arith.constant 0 : index
    %c18_85 = arith.constant 18 : index
    %98 = vector.load %arg7[%c0_83, %c0_84, %c18_85] : memref<1x4x292xf32, #tpu.memory_space<vmem>>, vector<1x4x256xf32>
    %99 = vector.shape_cast %98 : vector<1x4x256xf32> to vector<4x256xf32>
    %c16_86 = arith.constant 16 : index
    %c0_87 = arith.constant 0 : index
    %100 = vector.load %arg8[%c16_86, %c0_87] : memref<36x256xf32, #tpu.memory_space<vmem>>, vector<4x256xf32>
    tpu.vector_store %arg8[%c16_86, %c0_87], %99 {strides = array<i32>} : memref<36x256xf32, #tpu.memory_space<vmem>>, vector<4x256xf32>,
    %c0_88 = arith.constant 0 : index
    %c0_89 = arith.constant 0 : index
    %c19_90 = arith.constant 19 : index
    %101 = vector.load %arg7[%c0_88, %c0_89, %c19_90] : memref<1x4x292xf32, #tpu.memory_space<vmem>>, vector<1x4x256xf32>
    %102 = vector.shape_cast %101 : vector<1x4x256xf32> to vector<4x256xf32>
    %cst_91 = arith.constant 0.000000e+00 : f32
    %103 = vector.broadcast %cst_91 : f32 to vector<4x256xf32>
    %104 = arith.select %20, %102, %103 : vector<4x256xi1>, vector<4x256xf32>
    %c20_92 = arith.constant 20 : index
    %c0_93 = arith.constant 0 : index
    %105 = vector.load %arg8[%c20_92, %c0_93] : memref<36x256xf32, #tpu.memory_space<vmem>>, vector<4x256xf32>
    tpu.vector_store %arg8[%c20_92, %c0_93], %104 {strides = array<i32>} : memref<36x256xf32, #tpu.memory_space<vmem>>, vector<4x256xf32>,
    %c0_94 = arith.constant 0 : index
    %c0_95 = arith.constant 0 : index
    %c33_96 = arith.constant 33 : index
    %106 = vector.load %arg7[%c0_94, %c0_95, %c33_96] : memref<1x4x292xf32, #tpu.memory_space<vmem>>, vector<1x4x256xf32>
    %107 = vector.shape_cast %106 : vector<1x4x256xf32> to vector<4x256xf32>
    %cst_97 = arith.constant 0.000000e+00 : f32
    %108 = vector.broadcast %cst_97 : f32 to vector<4x256xf32>
    %109 = arith.select %18, %107, %108 : vector<4x256xi1>, vector<4x256xf32>
    %c24_98 = arith.constant 24 : index
    %c0_99 = arith.constant 0 : index
    %110 = vector.load %arg8[%c24_98, %c0_99] : memref<36x256xf32, #tpu.memory_space<vmem>>, vector<4x256xf32>
    tpu.vector_store %arg8[%c24_98, %c0_99], %109 {strides = array<i32>} : memref<36x256xf32, #tpu.memory_space<vmem>>, vector<4x256xf32>,
    %c0_100 = arith.constant 0 : index
    %c0_101 = arith.constant 0 : index
    %c34_102 = arith.constant 34 : index
    %111 = vector.load %arg7[%c0_100, %c0_101, %c34_102] : memref<1x4x292xf32, #tpu.memory_space<vmem>>, vector<1x4x256xf32>
    %112 = vector.shape_cast %111 : vector<1x4x256xf32> to vector<4x256xf32>
    %c28_103 = arith.constant 28 : index
    %c0_104 = arith.constant 0 : index
    %113 = vector.load %arg8[%c28_103, %c0_104] : memref<36x256xf32, #tpu.memory_space<vmem>>, vector<4x256xf32>
    tpu.vector_store %arg8[%c28_103, %c0_104], %112 {strides = array<i32>} : memref<36x256xf32, #tpu.memory_space<vmem>>, vector<4x256xf32>,
    %c0_105 = arith.constant 0 : index
    %c0_106 = arith.constant 0 : index
    %c35_107 = arith.constant 35 : index
    %114 = vector.load %arg7[%c0_105, %c0_106, %c35_107] : memref<1x4x292xf32, #tpu.memory_space<vmem>>, vector<1x4x256xf32>
    %115 = vector.shape_cast %114 : vector<1x4x256xf32> to vector<4x256xf32>
    %cst_108 = arith.constant 0.000000e+00 : f32
    %116 = vector.broadcast %cst_108 : f32 to vector<4x256xf32>
    %117 = arith.select %20, %115, %116 : vector<4x256xi1>, vector<4x256xf32>
    %c32_109 = arith.constant 32 : index
    %c0_110 = arith.constant 0 : index
    %118 = vector.load %arg8[%c32_109, %c0_110] : memref<36x256xf32, #tpu.memory_space<vmem>>, vector<4x256xf32>
    tpu.vector_store %arg8[%c32_109, %c0_110], %117 {strides = array<i32>} : memref<36x256xf32, #tpu.memory_space<vmem>>, vector<4x256xf32>,
    %c0_111 = arith.constant 0 : index
    %c0_112 = arith.constant 0 : index
    %119 = vector.load %arg4[%c0_111, %c0_112] : memref<4x36xf32, #tpu.memory_space<vmem>>, vector<4x36xf32>
    %c0_113 = arith.constant 0 : index
    %c0_114 = arith.constant 0 : index
    %120 = vector.load %arg8[%c0_113, %c0_114] : memref<36x256xf32, #tpu.memory_space<vmem>>, vector<36x256xf32>
    %cst_115 = arith.constant dense<0.000000e+00> : vector<4x256xf32>
    %121 = tpu.matmul %119, %120, %cst_115 {dimension_numbers = #tpu.dot_dimension_numbers<[1], [0], [0], [1], [0, 0, 1, 1], [], []>, precision = #tpu.contract_precision<fp32>} : vector<4x36xf32>, vector<36x256xf32>, vector<4x256xf32> -> vector<4x256xf32>
    %c0_116 = arith.constant 0 : index
    %c0_117 = arith.constant 0 : index
    %122 = vector.load %arg5[%c0_116, %c0_117] : memref<4x1xf32, #tpu.memory_space<vmem>>, vector<4x1xf32>
    %123 = vector.broadcast %122 : vector<4x1xf32> to vector<4x256xf32>
    %124 = arith.addf %121, %123 : vector<4x256xf32>
    %c0_118 = arith.constant 0 : index
    %c0_119 = arith.constant 0 : index
    %c0_120 = arith.constant 0 : index
    %125 = vector.load %arg1[%c0_118, %c0_119, %c0_120] : memref<1x4x256xf32, #tpu.memory_space<vmem>>, vector<1x4x256xf32>
    %126 = vector.shape_cast %125 : vector<1x4x256xf32> to vector<4x256xf32>
    %127 = arith.addf %124, %126 : vector<4x256xf32>
    %cst_121 = arith.constant 0.000000e+00 : f32
    %128 = vector.broadcast %cst_121 : f32 to vector<4x256xf32>
    %129 = arith.maximumf %127, %128 : vector<4x256xf32>
    %c0_122 = arith.constant 0 : index
    %c0_123 = arith.constant 0 : index
    %c0_124 = arith.constant 0 : index
    %130 = vector.load %arg6[%c0_122, %c0_123, %c0_124] : memref<1x4x256xf32, #tpu.memory_space<vmem>>, vector<1x4x256xf32>
    %131 = vector.shape_cast %130 : vector<1x4x256xf32> to vector<4x256xf32>
    %132 = vector.shape_cast %129 : vector<4x256xf32> to vector<1x4x256xf32>
    tpu.vector_store %arg6[%c0_122, %c0_123, %c0_124], %132 {strides = array<i32>} : memref<1x4x256xf32, #tpu.memory_space<vmem>>, vector<1x4x256xf32>,
    return
  }
  func.func @transform_0(%arg0: i32) -> (i32, i32, i32) {
    %c0_i32 = arith.constant 0 : i32
    %c0_i32_0 = arith.constant 0 : i32
    %c0_i32_1 = arith.constant 0 : i32
    return %arg0, %c0_i32, %c0_i32_0 : i32, i32, i32
  }
  func.func @transform_1(%arg0: i32) -> (i32, i32) {
    %c0_i32 = arith.constant 0 : i32
    %c0_i32_0 = arith.constant 0 : i32
    %c0_i32_1 = arith.constant 0 : i32
    return %c0_i32, %c0_i32_0 : i32, i32
  }
  func.func @transform_2(%arg0: i32) -> (i32, i32) {
    %c0_i32 = arith.constant 0 : i32
    %c0_i32_0 = arith.constant 0 : i32
    %c0_i32_1 = arith.constant 0 : i32
    return %c0_i32, %c0_i32_0 : i32, i32
  }
  func.func @transform_3(%arg0: i32) -> (i32, i32) {
    %c0_i32 = arith.constant 0 : i32
    %c0_i32_0 = arith.constant 0 : i32
    %c0_i32_1 = arith.constant 0 : i32
    return %c0_i32, %c0_i32_0 : i32, i32
  }
  func.func @transform_4(%arg0: i32) -> (i32, i32) {
    %c0_i32 = arith.constant 0 : i32
    %c0_i32_0 = arith.constant 0 : i32
    %c0_i32_1 = arith.constant 0 : i32
    return %c0_i32, %c0_i32_0 : i32, i32
  }
  func.func @transform_5(%arg0: i32) -> (i32, i32, i32) {
    %c0_i32 = arith.constant 0 : i32
    %c0_i32_0 = arith.constant 0 : i32
    %c0_i32_1 = arith.constant 0 : i32
    return %arg0, %c0_i32, %c0_i32_0 : i32, i32, i32
  }
}

</mosaic_0001>

<bundles_post_ra>
// kernel: tpu_custom_call.1
= control target key start
LH: loop header
LB: loop body
LE: loop exit
PB: predicated region body
PF: predicated region fallthrough
CT: control target
= control target key end

     0   :  { %10 = vsyncpa [#allocation5], 0  ;;  %s2843_s0 = inlined_call_operand.hbm [shape: f32[2,4,256], index: 0, kind: input, shape index: {}]   ;;  %s2844_s1 = inlined_call_operand.vmem [shape: f32[4,36], index: 1, kind: input, shape index: {}]   ;;  %s2845_s2 = inlined_call_operand.vmem [shape: f32[4,1], index: 2, kind: input, shape index: {}]   ;;  %s2846_s3 = inlined_call_operand.vmem [shape: f32[4,36], index: 3, kind: input, shape index: {}]   ;;  %s2847_s4 = inlined_call_operand.vmem [shape: f32[4,1], index: 4, kind: input, shape index: {}]   ;;  %s2848_s5 = inlined_call_operand.hbm [shape: f32[2,4,256], index: 5, kind: output, shape index: {}]  }
   0x1   :  { %12 = vsyncpa [#allocation5 + $0x1], 0 }
   0x2   :  { %13 = vsyncpa [#allocation6], 0 }
   0x3   :  { %15 = vsyncpa [#allocation6 + $0x1], 0  ;;  %s2182_s18 = smov 0   ;;  %s2184_s19 = smov 0  }
   0x4   :  { %s2186_s20 = smov 0   ;;  %s2188_s21 = smov 0  }
   0x5 LB: > { %s2203_s22 = sadd.s32 4294967295, %s2136_s21   ;;  %s1960_s23 = sadd.s32 4294967294, %s2136_s21   ;;  %s2136_s21 = sphi %s2188_s21, %s2881_s21   ;;  %s2132_s20 = sphi %s2186_s20, %s2880_s20   ;;  %s2128_s19 = sphi %s2184_s19, %s2879_s19   ;;  %s2124_s18 = sphi %s2182_s18, %s2878_s18  }
   0x6   : > { %s2207_s24 = sadd.s32 1, %s2136_s21   ;;  %s28_s25 = sadd.s32 1, %s2132_s20 }
   0x7   : > { %s25_s26 = ssub.s32 %s2136_s21, %s2207_s24  ;;  %p35_p0 = scmp.ne.s32.totalorder %s2132_s20, %s2128_s19 }
   0x8   : > { %p26_p1 = scmp.eq.s32.totalorder %s25_s26, 0  ;;  %p36_p2 = scmp.eq.s32.totalorder %s2136_s21, 0 }
   0x9   : > { %p41_p3 = scmp.ne.s32.totalorder %s2128_s19, %s2124_s18  ;;  %p42_p4 = scmp.eq.s32.totalorder %s2203_s22, 0 }
   0xa   : > { %s2219_s27 = scalar_select %p26_p1, %s2132_s20, %s28_s25  }
   0xb   : > { %p2221_p5 = por %p36_p2, %p35_p0  ;;  %p2225_p6 = por %p42_p4, %p41_p3 }
   0xc   : > { %p149_p7 = scmp.eq.s32.totalorder %s2203_s22, 1  ;;  %p155_p8 = scmp.eq.s32.totalorder %s1960_s23, 1 }
   0xd   : > { %s2854_s29 = scalar_select %p2225_p6, 1, 0 }
   0xe   : > { %p1988_p10 = scmp.lt.s32.totalorder %s2136_s21, 2  ;;  %p2232_p11 = por %p149_p7, %p35_p0 }
   0xf   : > { %p2236_p12 = por %p155_p8, %p41_p3  ;;  %s187_s7 = sand.u32 1, %s2132_s20  }
  0x10   : > { %s2855_s30 = scalar_select %p2232_p11, 1, 0 }
  0x11   : > { %s2856_s6 = scalar_select %p2236_p12, 1, 0 }
  0x12   : > { %s1974_s8 = sshll.u32 %s2136_s21, 7  ;;  %s1963_s9 = sshll.u32 %s187_s7, 3 }
  0x13   : > { %s2245_s12 = scalar_lea.hbm %s2843_s0, %s1974_s8  ;;  %s191_s13 = scalar_lea.vmem [#allocation4], %s1963_s9 }
  0x14   : > { %s199_s14 = sshll.u32 %s191_s13, 4  ;;  %p2249_p13 = pnand %p1988_p10, %p2221_p5  ;;  %s2253_s14 = int_to_ptr.vmem [resolvable:$true] %s199_s14 }
  0x15   : > { %s188_s16 = scalar_lea.sflag [#allocation5], %s187_s7  ;;  %s2044_s17 = scalar_lea.hbm %s2245_s12, 128 }
  0x16   : > { %p2045_p2 = scmp.ne.s32.totalorder %s2245_s12, %s2044_s17  ;;  %p2046_p3 = pneg %p2249_p13 }
  0x17   : > { %s2049_s26 = scalar_lea.hbm %s2843_s0, 256  ;;  %p2050_p5 = scmp.lt.s32.totalorder %s2245_s12, %s2843_s0 }
  0x18   : > { %p2047_p4 = pnand %p2046_p3, %p2045_p2  ;;  %p2051_p8 = scmp.lt.s32.totalorder %s2049_s26, %s2044_s17 }
  0x1a   : > { %p2048_p7 = pneg %p2047_p4  ;;  %p2052_p10 = por %p2051_p8, %p2050_p5 }
  0x1c   : > { %p2053_p9 = pnand %p2052_p10, %p2048_p7 }
  0x1e   : > { %2056 = shalt.err (!%p2053_p9)
}
  0x1f   : > { %s2057_s7 = scalar_lea.vmem %s2253_s14, 128  ;;  %s2138_s9 = smov [#allocation4]  }
  0x20   : > { %p2058_p0 = scmp.ne.s32.totalorder %s2253_s14, %s2057_s7  ;;  %s2062_s10 = sshll.u32 %s2138_s9, 4  ;;  %s2063_s10 = int_to_ptr.vmem [resolvable:$false] %s2062_s10 }
  0x21   : > { %s2064_s11 = scalar_lea.vmem %s2063_s10, 256  ;;  %p2065_p4 = scmp.lt.s32.totalorder %s2253_s14, %s2063_s10 }
  0x22   : > { %p2060_p1 = pnand %p2058_p0, %p2046_p3  ;;  %p2066_p12 = scmp.lt.s32.totalorder %s2064_s11, %s2057_s7 }
  0x24   : > { %p2061_p2 = pneg %p2060_p1  ;;  %p2067_p11 = por %p2066_p12, %p2065_p4 }
  0x26   : > { %p2068_p6 = pnand %p2067_p11, %p2061_p2 }
  0x28   : > { %2071 = shalt.err (!%p2068_p6)
}
  0x29   : > { %1983 = dma.hbm_to_vmem [thread:$0]  (!%p2249_p13), %s2245_s12, 128, %s2253_s14, %s188_s16  }
  0x2a   : > { %p2858_p9 = scmp.lt.s32.totalorder %s2136_s21, 3  ;;  %p2859_p7 = scmp.ge.s32.totalorder %s2136_s21, 1 }
  0x2c   : > { %p205_p0 = pnand %p2859_p7, %p2858_p9 }
  0x2d   : > { %s2280_s13 = sand.u32 (!%p205_p0), 1, %s2128_s19   ;;  %p2860_p6 = scmp.ne.s32.totalorder (!%p205_p0), %s2854_s29, 0 }
  0x2e   : > { %208 = sbr.rel (%p205_p0) target bundleno = 1142 (0x476), region = 40  ;;  %s1967_s17 = sshll.u32 (!%p205_p0), %s2280_s13, 3 }
  0x2f   : > { %s211_s23 = scalar_lea.sflag (!%p205_p0), [#allocation5], %s2280_s13  ;;  %s2286_s15 = scalar_lea.vmem (!%p205_p0), [#allocation4], %s1967_s17 }
  0x33   : > { %2115 = dma.done.wait (%p2860_p6), %s211_s23, 128  }
  0x34   : > { %2117 = vsyncadd (%p2860_p6), %s211_s23, 4294967168  ;;  %vm272_vm0 = vcmask 142336   ;;  %vm274_vm1 = vcmask 289936   ;;  %v2139_v0 = vmov 0.0   ;;  %v276_v1 = vld [vmem:[%s2286_s15] sm:$0xff]  ;;  %s2140_s12 = smov 18   ;;  %v241_v21 = vlaneseq }
  0x35   : > { %273 = vst.msk [vmem:[#allocation2] sm:$0xf] %vm272_vm0, %v2139_v0  ;;  %580 = vmatprep.mubr.f32.mxu0 %v2139_v0  ;;  %706 = vmatprep.mubr.f32.mxu1 %v2139_v0  ;;  %vm285_vm2 = vcmask 1043600   ;;  %vm286_vm3 = vcmask 1047556   ;;  %vm281_vm4 = vcmask 146432   ;;  %s2141_s29 = smov 93  }
  0x36   : > { %275 = vst.msk [vmem:[#allocation2 + $0x8] sm:$0xf] %vm274_vm1, %v2139_v0  ;;  %278 = vrot.lane.b32.xlu0 %v276_v1, %s2140_s12  ;;  %vm2299_vm5 = vmor %vm286_vm3, %vm285_vm2  ;;  %s2142_s14 = smov 109   ;;  %s2143_s16 = smov 94   ;;  %v489_v18 = vld [vmem:[%s2845_s2] sm:$0xf] }
  0x37   : > { %s2144_s25 = smov 95   ;;  %s2145_s26 = smov 110   ;;  %v2150_v19 = vmov 0   ;;  %v242_v24 = vand.u32 127, %v241_v21  ;;  %vm469_vm6 = vcmask 760832   ;;  %vm404_vm8 = vcmask 891904  }
  0x38   : > { %s2146_s28 = smov 111   ;;  %s2147_s8 = smov 127   ;;  %2034 = vset.pattern.permute.xlu0 %v2150_v19  ;;  %vm430_vm10 = vcmask 777216   ;;  %vm2851_vm12 = vcmask 1043456   ;;  %vm360_vm13 = vcmask 908288   ;;  %vm451_vm15 = vcmask 769024  }
  0x39   : > { %s2148_s7 = smov 125   ;;  %s2149_s9 = smov 126   ;;  %v243_v27 = vadd.s32 128, %v242_v24  ;;  %v248_v34 = vand.u32 15, %v242_v24  ;;  %vm386_vm1 = vcmask 900096   ;;  %vm2852_vm2 = vcmask 1022976  }
  0x3a   : > { %v478_v21 = vld [vmem:[%s2844_s1] sm:$0xf]  ;;  %vm495_vm3 = vcmask 293888   ;;  %p2875_p12 = scmp.ne.s32.totalorder %s2855_s30, 0  ;;  %s2151_s23 = smov [#allocation7]  }
  0x3b   : > { %v255_v30 = vand.u32 15, %v243_v27  ;;  %vm2352_vm9 = vcmp.le.s32.totalorder %v248_v34, 14  ;;  %vm2381_vm14 = vcmp.ge.s32.totalorder %v248_v34, 1 }
  0x3d   : > { %vm2343_vm7 = vcmp.le.s32.totalorder %v255_v30, 14  ;;  %vm2364_vm11 = vcmp.ge.s32.totalorder %v255_v30, 1 }
  0xa8   : > { %v279_v2 = vpop.permute.xlu0 %278 }
  0xa9   : > { %v280_v4 = vrot.slane %v279_v2, 4 }
  0xab   : > { %v282_v5 = vsel %vm281_vm4, %v280_v4, %v279_v2  ;;  %289 = vst.msk [vmem:[#allocation2 + $0x8] sm:$0xf] %vm272_vm0, %v280_v4 }
  0xac   : > { %288 = vst.msk [vmem:[#allocation2] sm:$0xff] %vm2299_vm5, %v282_v5 }
  0xb2   : > { %v459_v6 = vld [vmem:[#allocation2 + $0x8] sm:$0xf] }
  0xb3   : > { %467 = vrot.lane.b32.xlu1 %v459_v6, %s2141_s29  ;;  %v393_v7 = vld [vmem:[#allocation2] sm:$0xff]  ;;  %v394_v8 = vld [vmem:[#allocation2 + $0x8] sm:$0xf] }
  0xb4   : > { %398 = vrot.lane.b32.xlu0 %v393_v7, %s2142_s14  ;;  %v420_v9 = vld [vmem:[#allocation2 + $0x8] sm:$0xf]  ;;  %v462_v12 = vcombine.high %v393_v7, %v393_v7  ;;  %v443_v15 = vcombine.low %v393_v7, %v393_v7 }
  0xb5   : > { %v350_v10 = vld [vmem:[#allocation2 + $0x8] sm:$0xf] }
  0xb6   : > { %v376_v11 = vld [vmem:[#allocation2 + $0x8] sm:$0xf] }
  0xb7   : > { %402 = vrot.lane.b32.xlu1 %v394_v8, %s2142_s14  ;;  %v330_v13 = vld [vmem:[#allocation2 + $0x8] sm:$0xf] }
  0xb8   : > { %447 = vrot.lane.b32.xlu0 %v393_v7, %s2143_s16  ;;  %v291_v14 = vld [vmem:[#allocation2 + $0x8] sm:$0xf] }
  0xb9   : > { %v2037_v16 = vld [vmem:[#allocation2 + $0x8] ss:$0 sps:$4 sm:$0xff]  }
  0xba   : > { %v2038_v17 = vld [vmem:[#allocation2 + $0x8] ss:$0 sps:$4 sm:$0xff]  }
  0xbb   : > { %428 = vrot.lane.b32.xlu1 %v420_v9, %s2144_s25 }
  0xbc   : > { %380 = vrot.lane.b32.xlu0 %v393_v7, %s2145_s26 }
  0xbf   : > { %358 = vrot.lane.b32.xlu1 %v350_v10, %s2146_s28 }
  0xc0   : > { %295 = vrot.lane.b32.xlu0 %v393_v7, %s2147_s8 }
  0xc3   : > { %384 = vrot.lane.b32.xlu1 %v376_v11, %s2145_s26 }
  0xc4   : > { %465 = vrot.lane.b32.xlu0 %v462_v12, %s2141_s29 }
  0xc7   : > { %338 = vrot.lane.b32.xlu1 %v330_v13, %s2148_s7 }
  0xc8   : > { %400 = vrot.lane.b32.xlu0 %v462_v12, %s2142_s14 }
  0xcb   : > { %299 = vrot.lane.b32.xlu1 %v291_v14, %s2147_s8 }
  0xcc   : > { %426 = vrot.lane.b32.xlu0 %v462_v12, %s2144_s25 }
  0xcf   : > { %463 = vrot.lane.b32.xlu1 %v393_v7, %s2141_s29 }
  0xd0   : > { %356 = vrot.lane.b32.xlu0 %v462_v12, %s2146_s28 }
  0xd3   : > { %424 = vrot.lane.b32.xlu1 %v393_v7, %s2144_s25 }
  0xd4   : > { %445 = vrot.lane.b32.xlu0 %v443_v15, %s2143_s16 }
  0xd7   : > { %354 = vrot.lane.b32.xlu1 %v393_v7, %s2146_s28 }
  0xd8   : > { %382 = vrot.lane.b32.xlu0 %v462_v12, %s2145_s26 }
  0xdb   : > { %334 = vrot.lane.b32.xlu1 %v393_v7, %s2148_s7 }
  0xdc   : > { %336 = vrot.lane.b32.xlu0 %v462_v12, %s2148_s7 }
  0xdf   : > { %449 = vrot.lane.b32.xlu1 %v2037_v16, %s2143_s16 }
  0xe0   : > { %297 = vrot.lane.b32.xlu0 %v462_v12, %s2147_s8 }
  0xe3   : > { %318 = vrot.lane.b32.xlu1 %v393_v7, %s2149_s9 }
  0xe4   : > { %320 = vrot.lane.b32.xlu0 %v2038_v17, %s2149_s9 }
  0xe7   : > { %316 = vrot.lane.b32.xlu1 %v443_v15, %s2149_s9 }
  0xe8   : > { %492 = vperm.xlu0 %2034, %v489_v18  }
 0x125   : > { %v468_v20 = vpop.permute.xlu1 %467 }
 0x126   : > { %v399_v22 = vpop.permute.xlu0 %398 }
 0x129   : > { %v403_v23 = vpop.permute.xlu1 %402 }
 0x12a   : > { %v2337_v25 = vpop.permute.xlu0 %447 }
 0x12d   : > { %v429_v26 = vpop.permute.xlu1 %428 }
 0x12e   : > { %v2339_v28 = vpop.permute.xlu0 %380 }
 0x131   : > { %v359_v29 = vpop.permute.xlu1 %358 }
 0x132   : > { %v2341_v31 = vpop.permute.xlu0 %295 }
 0x135   : > { %v385_v32 = vpop.permute.xlu1 %384 }
 0x136   : > { %v466_v35 = vpop.permute.xlu0 %465 }
 0x137   : > { %v471_v36 = vsel %vm469_vm6, %v466_v35, %v468_v20 }
 0x138   : > { %v475_v37 = vsel %vm2343_vm7, %v471_v36, 0.0 }
 0x139   : > { %477 = vst [vmem:[#allocation3 + $0x38] sm:$0xf] %v475_v37  ;;  %v2350_v38 = vpop.permute.xlu1 %338 }
 0x13a   : > { %v401_v40 = vpop.permute.xlu0 %400 }
 0x13b   : > { %v405_v41 = vsel %vm404_vm8, %v399_v22, %v401_v40  ;;  %v406_v42 = vsel %vm404_vm8, %v401_v40, %v403_v23 }
 0x13c   : > { %v409_v43 = vsel %vm2352_vm9, %v405_v41, 0.0  ;;  %v410_v44 = vsel %vm2343_vm7, %v406_v42, 0.0 }
 0x13d   : > { %v413_v45 = vrot.slane %v409_v43, 4  ;;  %v414_v46 = vrot.slane %v410_v44, 4  ;;  %v2362_v47 = vpop.permute.xlu1 %299 }
 0x13e   : > { %v427_v49 = vpop.permute.xlu0 %426 }
 0x13f   : > { %417 = vst [vmem:[#allocation3 + $0x48] sm:$0xf0] %v413_v45  ;;  %418 = vst [vmem:[#allocation3 + $0x28] sm:$0xf0] %v414_v46  ;;  %v432_v50 = vsel %vm430_vm10, %v427_v49, %v429_v26 }
 0x140   : > { %v436_v51 = vsel %vm2364_vm11, %v432_v50, 0.0  ;;  %v488_v52 = vld [vmem:[#allocation3 + $0x38] sm:$0xf] }
 0x141   : > { %438 = vst [vmem:[#allocation3 + $0x20] sm:$0xf] %v436_v51  ;;  %v464_v53 = vpop.permute.xlu1 %463  ;;  %v504_v54 = vsel %vm2851_vm12, %v488_v52, 0 }
 0x142   : > { %v470_v55 = vsel %vm469_vm6, %v464_v53, %v466_v35  ;;  %v357_v56 = vpop.permute.xlu0 %356  ;;  %v2373_v57 = vand.u32 4294901760, %v504_v54 }
 0x143   : > { %v474_v58 = vsel %vm2352_vm9, %v470_v55, 0.0  ;;  %v362_v59 = vsel %vm360_vm13, %v357_v56, %v359_v29  ;;  %v497_v29 = vsel %vm495_vm3, %v478_v21, 0 }
 0x144   : > { %476 = vst [vmem:[#allocation3 + $0x40] sm:$0xf] %v474_v58  ;;  %v366_v60 = vsel %vm2364_vm11, %v362_v59, 0.0  ;;  %529 = vmatprep.subr.mxu0 %v2373_v57  ;;  %v2386_v62 = vsub.f32 %v504_v54, %v2373_v57  ;;  %v2431_v43 = vand.u32 4294901760, %v497_v29 }
 0x145   : > { %v370_v63 = vrot.slane %v366_v60, 4  ;;  %v425_v1 = vpop.permute.xlu1 %424 }
 0x146   : > { %v431_v2 = vsel %vm430_vm10, %v425_v1, %v427_v49  ;;  %v446_v4 = vpop.permute.xlu0 %445  ;;  %v616_v5 = vand.u32 4294901760, %v2386_v62  ;;  %v2445_v52 = vsub.f32 %v497_v29, %v2431_v43 }
 0x147   : > { %374 = vst [vmem:[#allocation3 + $0x10] sm:$0xf0] %v370_v63  ;;  %v435_v6 = vsel %vm2381_vm14, %v431_v2, 0.0  ;;  %v452_v7 = vsel %vm451_vm15, %v446_v4, %v2337_v25 }
 0x148   : > { %437 = vst [vmem:[#allocation3 + $0x8] sm:$0xf] %v435_v6  ;;  %456 = vst [vmem:[#allocation3 + $0x8] sm:$0xf0] %v452_v7  ;;  %v617_v8 = vsub.f32 %v2386_v62, %v616_v5  ;;  %v583_v6 = vand.u32 4294901760, %v2445_v52 }
 0x149   : > { %v355_v9 = vpop.permute.xlu1 %354 }
 0x14a   : > { %v361_v10 = vsel %vm360_vm13, %v355_v9, %v357_v56  ;;  %v383_v11 = vpop.permute.xlu0 %382  ;;  %v618_v12 = vand.u32 4294901760, %v617_v8 }
 0x14b   : > { %v365_v13 = vsel %vm2381_vm14, %v361_v10, 0.0  ;;  %v387_v14 = vsel %vm386_vm1, %v2339_v28, %v383_v11  ;;  %v388_v15 = vsel %vm386_vm1, %v383_v11, %v385_v32  ;;  %v487_v16 = vld [vmem:[#allocation3 + $0x40] sm:$0xf] }
 0x14c   : > { %v369_v17 = vrot.slane %v365_v13, 4  ;;  %391 = vst [vmem:[#allocation3 + $0x48] sm:$0xf] %v387_v14  ;;  %392 = vst [vmem:[#allocation3 + $0x28] sm:$0xf] %v388_v15  ;;  %619 = vmatprep.subr.mxu1 %v618_v12  ;;  %v501_v18 = vsel %vm2851_vm12, %v487_v16, 0  ;;  %v584_v15 = vsub.f32 %v2445_v52, %v583_v6 }
 0x14d   : > { %v335_v19 = vpop.permute.xlu1 %334  ;;  %v2404_v20 = vand.u32 4294901760, %v501_v18  ;;  %vm301_vm12 = vcmask 1039360  }
 0x14e   : > { %373 = vst [vmem:[#allocation3 + $0x18] sm:$0xf0] %v369_v17  ;;  %v337_v22 = vpop.permute.xlu0 %336 }
 0x14f   : > { %v341_v23 = vsel %vm2852_vm2, %v335_v19, %v337_v22  ;;  %v342_v24 = vsel %vm2852_vm2, %v337_v22, %v2350_v38  ;;  %531 = vmatpush1.msra.mxu0 %v2404_v20  ;;  %v2414_v26 = vsub.f32 %v501_v18, %v2404_v20  ;;  %v485_v34 = vld [vmem:[#allocation3 + $0x8] sm:$0xff]  ;;  %vm322_vm2 = vcmask 1031168  }
 0x150   : > { %v345_v27 = vsel %vm2352_vm9, %v341_v23, 0.0  ;;  %v346_v28 = vsel %vm2343_vm7, %v342_v24, 0.0  ;;  %v2437_v45 = vand.u32 4294901760, %v485_v34 }
 0x151   : > { %347 = vst [vmem:[#allocation3 + $0x18] sm:$0xf] %v345_v27  ;;  %348 = vst [vmem:[#allocation3 + $0x10] sm:$0xf] %v346_v28  ;;  %v450_v30 = vpop.permute.xlu1 %449  ;;  %v622_v32 = vand.u32 4294901760, %v2414_v26 }
 0x152   : > { %v453_v35 = vsel %vm451_vm15, %v2337_v25, %v450_v30  ;;  %v298_v36 = vpop.permute.xlu0 %297  ;;  %v2448_v55 = vsub.f32 %v485_v34, %v2437_v45  ;;  %v585_v30 = vand.u32 4294901760, %v584_v15 }
 0x153   : > { %457 = vst [vmem:[#allocation3 + $0x20] sm:$0xf0] %v453_v35  ;;  %v302_v37 = vsel %vm301_vm12, %v2341_v31, %v298_v36  ;;  %v303_v38 = vsel %vm301_vm12, %v298_v36, %v2362_v47  ;;  %v623_v40 = vsub.f32 %v2414_v26, %v622_v32  ;;  %v484_v41 = vld [vmem:[#allocation3 + $0x28] sm:$0xff] }
 0x154   : > { %v483_v42 = vld [vmem:[#allocation3 + $0x48] sm:$0xff]  ;;  %v306_v44 = vsel %vm2381_vm14, %v302_v37, 0.0  ;;  %v307_v25 = vsel %vm2364_vm11, %v303_v38, 0.0  ;;  %v2439_v47 = vand.u32 4294901760, %v484_v41  ;;  %v634_v8 = vand.u32 4294901760, %v2448_v55 }
 0x155   : > { %308 = vst [vmem:[#allocation3 + $0x30] sm:$0xf] %v306_v44  ;;  %309 = vst [vmem:[#allocation3] sm:$0xf] %v307_v25  ;;  %v319_v31 = vpop.permute.xlu1 %318  ;;  %v624_v46 = vand.u32 4294901760, %v623_v40  ;;  %v2441_v50 = vand.u32 4294901760, %v483_v42 }
 0x156   : > { %v321_v49 = vpop.permute.xlu0 %320  ;;  %v2455_v60 = vsub.f32 %v484_v41, %v2439_v47  ;;  %v635_v18 = vsub.f32 %v2448_v55, %v634_v8 }
 0x157   : > { %v324_v51 = vsel %vm322_vm2, %v319_v31, %v321_v49  ;;  %625 = vmatpush1.msra.mxu1 %v624_v46  ;;  %v2459_v2 = vsub.f32 %v483_v42, %v2441_v50 }
 0x158   : > { %328 = vst [vmem:[#allocation3] sm:$0xf0] %v324_v51  ;;  %v482_v53 = vld [vmem:[#allocation3 + $0x10] sm:$0xff]  ;;  %v481_v54 = vld [vmem:[#allocation3 + $0x18] sm:$0xff]  ;;  %v640_v11 = vand.u32 4294901760, %v2455_v60  ;;  %v636_v35 = vand.u32 4294901760, %v635_v18 }
 0x159   : > { %v317_v56 = vpop.permute.xlu1 %316  ;;  %v2450_v58 = vand.u32 4294901760, %v482_v53  ;;  %v2452_v59 = vand.u32 4294901760, %v481_v54  ;;  %v646_v12 = vand.u32 4294901760, %v2459_v2 }
 0x15a   : > { %v323_v63 = vsel %vm322_vm2, %v317_v56, %v319_v31  ;;  %v486_v1 = vld [vmem:[#allocation3 + $0x20] sm:$0xff]  ;;  %v641_v22 = vsub.f32 %v2455_v60, %v640_v11 }
 0x15b   : > { %327 = vst [vmem:[#allocation3 + $0x30] sm:$0xf0] %v323_v63  ;;  %v2461_v4 = vand.u32 4294901760, %v486_v1  ;;  %v2465_v7 = vsub.f32 %v482_v53, %v2450_v58  ;;  %v2469_v9 = vsub.f32 %v481_v54, %v2452_v59  ;;  %v647_v24 = vsub.f32 %v2459_v2, %v646_v12 }
 0x15c   : > { %v642_v38 = vand.u32 4294901760, %v641_v22 }
 0x15d   : > { %533 = vmatprep.subr.mxu0 %v2461_v4  ;;  %v2473_v10 = vsub.f32 %v486_v1, %v2461_v4  ;;  %v652_v16 = vand.u32 4294901760, %v2465_v7  ;;  %v658_v19 = vand.u32 4294901760, %v2469_v9  ;;  %v648_v41 = vand.u32 4294901760, %v647_v24 }
 0x15e   : > { %535 = vmatpush1.msra.mxu0 %v2437_v45 }
 0x15f   : > { %537 = vmatprep.subr.mxu0 %v2439_v47  ;;  %v480_v13 = vld [vmem:[#allocation3] sm:$0xff]  ;;  %v628_v14 = vand.u32 4294901760, %v2473_v10  ;;  %v653_v34 = vsub.f32 %v2465_v7, %v652_v16  ;;  %v659_v36 = vsub.f32 %v2469_v9, %v658_v19 }
 0x160   : > { %539 = vmatpush1.msra.mxu0 %v2441_v50  ;;  %v2485_v17 = vand.u32 4294901760, %v480_v13 }
 0x161   : > { %541 = vmatprep.subr.mxu0 %v2450_v58  ;;  %v629_v21 = vsub.f32 %v2473_v10, %v628_v14  ;;  %v654_v44 = vand.u32 4294901760, %v653_v34  ;;  %v660_v31 = vand.u32 4294901760, %v659_v36 }
 0x162   : > { %543 = vmatpush1.msra.mxu0 %v2452_v59  ;;  %v479_v23 = vld [vmem:[#allocation3 + $0x30] sm:$0xff]  ;;  %v663_v27 = vsub.f32 %v480_v13, %v2485_v17 }
 0x163   : > { %545 = vmatprep.subr.mxu0 %v2485_v17  ;;  %v2502_v28 = vand.u32 4294901760, %v479_v23  ;;  %v630_v29 = vand.u32 4294901760, %v629_v21 }
 0x164   : > { %v664_v37 = vand.u32 4294901760, %v663_v27 }
 0x165   : > { %547 = vmatpush1.msra.mxu0 %v2502_v28  ;;  %631 = vmatprep.subr.mxu1 %v630_v29  ;;  %v669_v40 = vsub.f32 %v479_v23, %v2502_v28  ;;  %v1278_v29 = vld [vmem:[%s2847_s4] sm:$0xf] }
 0x166   : > { %637 = vmatpush1.msra.mxu1 %v636_v35  ;;  %738 = vmatprep.subr.mxu0 %v2386_v62  ;;  %v665_v42 = vsub.f32 %v663_v27, %v664_v37  ;;  %v493_v62 = vpop.permute.xlu0 %492 }
 0x167   : > { %586 = vmatmul.mubr.f32.vlgmr.msra.gmra.mxu0 %v585_v30  ;;  %643 = vmatprep.subr.mxu1 %v642_v38  ;;  %v670_v25 = vand.u32 4294901760, %v669_v40 }
 0x168   : > { %741 = vmatpush1.msra.mxu0 %v2414_v26  ;;  %649 = vmatpush1.msra.mxu1 %v648_v41  ;;  %v666_v46 = vand.u32 4294901760, %v665_v42 }
 0x169   : > { %744 = vmatprep.subr.mxu0 %v2473_v10  ;;  %655 = vmatprep.subr.mxu1 %v654_v44  ;;  %v671_v49 = vsub.f32 %v669_v40, %v670_v25 }
 0x16a   : > { %747 = vmatpush1.msra.mxu0 %v2448_v55  ;;  %661 = vmatpush1.msra.mxu1 %v660_v31 }
 0x16b   : > { %750 = vmatprep.subr.mxu0 %v2455_v60  ;;  %667 = vmatprep.subr.mxu1 %v666_v46  ;;  %v672_v51 = vand.u32 4294901760, %v671_v49 }
 0x16c   : > { %753 = vmatpush1.msra.mxu0 %v2459_v2  ;;  %798 = vmatprep.mubr.f32.mxu0 %v2139_v0 }
 0x16d   : > { %756 = vmatprep.subr.mxu0 %v2465_v7  ;;  %673 = vmatpush1.msra.mxu1 %v672_v51 }
 0x16e   : > { %759 = vmatpush1.msra.mxu0 %v2469_v9  ;;  %708 = vmatmul.mubr.f32.vlgmr.msra.gmra.mxu1 %v2431_v43 }
 0x16f   : > { %762 = vmatprep.subr.mxu0 %v663_v27  ;;  %830 = vmatprep.subr.mxu1 %v2373_v57 }
 0x170   : > { %765 = vmatpush1.msra.mxu0 %v669_v40  ;;  %832 = vmatpush1.msra.mxu1 %v2404_v20 }
 0x171   : > { %801 = vmatmul.mubr.f32.vlgmr.msra.gmra.mxu0 %v2445_v52  ;;  %834 = vmatprep.subr.mxu1 %v2461_v4 }
 0x172   : > { %916 = vmatprep.subr.mxu0 %v616_v5  ;;  %836 = vmatpush1.msra.mxu1 %v2437_v45 }
 0x173   : > { %920 = vmatpush1.msra.mxu0 %v622_v32  ;;  %838 = vmatprep.subr.mxu1 %v2439_v47 }
 0x174   : > { %924 = vmatprep.subr.mxu0 %v628_v14  ;;  %840 = vmatpush1.msra.mxu1 %v2441_v50 }
 0x175   : > { %928 = vmatpush1.msra.mxu0 %v634_v8  ;;  %842 = vmatprep.subr.mxu1 %v2450_v58 }
 0x176   : > { %932 = vmatprep.subr.mxu0 %v640_v11  ;;  %844 = vmatpush1.msra.mxu1 %v2452_v59 }
 0x177   : > { %936 = vmatpush1.msra.mxu0 %v646_v12  ;;  %846 = vmatprep.subr.mxu1 %v2485_v17 }
 0x178   : > { %940 = vmatprep.subr.mxu0 %v652_v16  ;;  %848 = vmatpush1.msra.mxu1 %v2502_v28 }
 0x179   : > { %881 = vmatprep.mubr.f32.mxu1 %v2139_v0  ;;  %944 = vmatpush1.msra.mxu0 %v658_v19 }
 0x17a   : > { %885 = vmatmul.mubr.f32.vlgmr.msra.gmra.mxu1 %v583_v6  ;;  %948 = vmatprep.subr.mxu0 %v664_v37 }
 0x17b   : > { %1016 = vmatprep.subr.mxu1 %v2373_v57  ;;  %952 = vmatpush1.msra.mxu0 %v670_v25 }
 0x17c   : > { %985 = vmatprep.mubr.f32.mxu0 %v2139_v0  ;;  %1018 = vmatpush1.msra.mxu1 %v2404_v20 }
 0x17d   : > { %987 = vmatmul.mubr.f32.vlgmr.msra.gmra.mxu0 %v2431_v43  ;;  %1020 = vmatprep.subr.mxu1 %v2461_v4 }
 0x17e   : > { %1022 = vmatpush1.msra.mxu1 %v2437_v45  ;;  %1067 = vmatprep.mubr.f32.mxu1 %v2139_v0 }
 0x17f   : > { %1024 = vmatprep.subr.mxu1 %v2439_v47  ;;  %1367 = vmatprep.mubr.f32.mxu0 %v2139_v0 }
 0x180   : > { %1026 = vmatpush1.msra.mxu1 %v2441_v50 }
 0x181   : > { %1028 = vmatprep.subr.mxu1 %v2450_v58 }
 0x182   : > { %1030 = vmatpush1.msra.mxu1 %v2452_v59 }
 0x183   : > { %1032 = vmatprep.subr.mxu1 %v2485_v17 }
 0x184   : > { %1034 = vmatpush1.msra.mxu1 %v2502_v28 }
 0x185   : > { %1069 = vmatmul.mubr.f32.vlgmr.msra.gmra.mxu1 %v2431_v43 }
 0x186   : > { %1493 = vmatprep.mubr.f32.mxu1 %v2139_v0 }
 0x227   : > { %v587_v57 = vpop.f32.mrf.mxu0 }
 0x228   : > { %v588_v26 = vadd.f32 %v587_v57, %v493_v62 }
 0x229   : > { %v589_v5 = vpop.f32.mrf.mxu0 }
 0x22a   : > { %v590_v32 = vadd.f32 %v589_v5, %v493_v62 }
 0x22e   : > { %v709_v20 = vpop.f32.mrf.mxu1 }
 0x22f   : > { %v710_v50 = vadd.f32 %v709_v20, %v588_v26 }
 0x230   : > { %v711_v45 = vpop.f32.mrf.mxu1 }
 0x231   : > { %v802_v47 = vpop.f32.mrf.mxu0  ;;  %v712_v53 = vadd.f32 %v711_v45, %v590_v32 }
 0x232   : > { %v803_v55 = vadd.f32 %v802_v47, %v710_v50 }
 0x233   : > { %v804_v54 = vpop.f32.mrf.mxu0 }
 0x234   : > { %v805_v59 = vadd.f32 %v804_v54, %v712_v53 }
 0x23a   : > { %v886_v52 = vpop.f32.mrf.mxu1 }
 0x23b   : > { %v887_v60 = vadd.f32 %v886_v52, %v803_v55 }
 0x23c   : > { %v888_v56 = vpop.f32.mrf.mxu1 }
 0x23d   : > { %v988_v58 = vpop.f32.mrf.mxu0  ;;  %v889_v43 = vadd.f32 %v888_v56, %v805_v59 }
 0x23e   : > { %v989_v1 = vadd.f32 %v988_v58, %v887_v60 }
 0x23f   : > { %v990_v63 = vpop.f32.mrf.mxu0 }
 0x240   : > { %v991_v4 = vadd.f32 %v990_v63, %v889_v43 }
 0x245   : > { %v1070_v2 = vpop.f32.mrf.mxu1 }
 0x246   : > { %v1071_v6 = vadd.f32 %v1070_v2, %v989_v1 }
 0x247   : > { %v1072_v7 = vpop.f32.mrf.mxu1 }
 0x248   : > { %v1073_v8 = vadd.f32 %v1072_v7, %v991_v4  ;;  %v1075_v9 = vmax.f32 %v1071_v6, 0.0  ;;  %v1267_v6 = vld [vmem:[%s2846_s3] sm:$0xf] }
 0x24a   : > { %v1076_v10 = vmax.f32 %v1073_v8, 0.0 }
 0x24c   : > { %v1079_v11 = vcombine.low %v1075_v9, %v1076_v10  ;;  %v1285_v10 = vsel %vm495_vm3, %v1267_v6, 0 }
 0x24e   : > { %1080 = vrot.lane.b32.xlu1 %v1079_v11, %s2140_s12 }
 0x2c0   : > { %v1081_v12 = vpop.permute.xlu1 %1080 }
 0x2c1   : > { %v1082_v13 = vrot.slane %v1081_v12, 4 }
 0x2c3   : > { %v1083_v14 = vsel %vm281_vm4, %v1082_v13, %v1081_v12  ;;  %1087 = vst.msk [vmem:[#allocation2 + $0x8] sm:$0xf] %vm272_vm0, %v1082_v13  ;;  %vm2871_vm0 = vcmask 1022976  }
 0x2c4   : > { %1086 = vst.msk [vmem:[#allocation2] sm:$0xff] %vm2299_vm5, %v1083_v14  ;;  %vm2872_vm4 = vmmov %vm2871_vm0  ;;  %vm2873_vm5 = vcmask 1043456  }
 0x2ca   : > { %v1249_v15 = vld [vmem:[#allocation2 + $0x8] sm:$0xf] }
 0x2cb   : > { %v1187_v16 = vld [vmem:[#allocation2 + $0x8] sm:$0xf]  ;;  %1257 = vrot.lane.b32.xlu0 %v1249_v15, %s2141_s29  ;;  %v1186_v18 = vld [vmem:[#allocation2] sm:$0xff] }
 0x2cc   : > { %1195 = vrot.lane.b32.xlu1 %v1187_v16, %s2142_s14  ;;  %v1212_v17 = vld [vmem:[#allocation2 + $0x8] sm:$0xf]  ;;  %v1190_v22 = vcombine.high %v1186_v18, %v1186_v18  ;;  %v1234_v23 = vcombine.low %v1186_v18, %v1186_v18 }
 0x2cd   : > { %v1145_v19 = vld [vmem:[#allocation2 + $0x8] sm:$0xf] }
 0x2ce   : > { %v1170_v21 = vld [vmem:[#allocation2 + $0x8] sm:$0xf] }
 0x2cf   : > { %1191 = vrot.lane.b32.xlu0 %v1186_v18, %s2142_s14  ;;  %v1126_v3 = vld [vmem:[#allocation2 + $0x8] sm:$0xf] }
 0x2d0   : > { %1220 = vrot.lane.b32.xlu1 %v1212_v17, %s2144_s25  ;;  %v2041_v24 = vld [vmem:[#allocation2 + $0x8] ss:$0 sps:$4 sm:$0xff]  }
 0x2d1   : > { %v1089_v27 = vld [vmem:[#allocation2 + $0x8] sm:$0xf] }
 0x2d2   : > { %v2042_v28 = vld [vmem:[#allocation2 + $0x8] ss:$0 sps:$4 sm:$0xff]  }
 0x2d3   : > { %1238 = vrot.lane.b32.xlu0 %v1186_v18, %s2143_s16 }
 0x2d4   : > { %1153 = vrot.lane.b32.xlu1 %v1145_v19, %s2146_s28 }
 0x2d7   : > { %1174 = vrot.lane.b32.xlu0 %v1186_v18, %s2145_s26 }
 0x2d8   : > { %1178 = vrot.lane.b32.xlu1 %v1170_v21, %s2145_s26 }
 0x2db   : > { %1093 = vrot.lane.b32.xlu0 %v1186_v18, %s2147_s8 }
 0x2dc   : > { %1134 = vrot.lane.b32.xlu1 %v1126_v3, %s2148_s7 }
 0x2df   : > { %1193 = vrot.lane.b32.xlu0 %v1190_v22, %s2142_s14 }
 0x2e0   : > { %1253 = vrot.lane.b32.xlu1 %v1186_v18, %s2141_s29 }
 0x2e3   : > { %1218 = vrot.lane.b32.xlu0 %v1190_v22, %s2144_s25 }
 0x2e4   : > { %1216 = vrot.lane.b32.xlu1 %v1186_v18, %s2144_s25  ;;  %s1975_s25 = sshll.u32 %s2203_s22, 7  ;;  %s2076_s22 = sshll.u32 %s2151_s23, 4  ;;  %s2077_s22 = int_to_ptr.vmem [resolvable:$false] %s2076_s22 }
 0x2e7   : > { %1151 = vrot.lane.b32.xlu0 %v1190_v22, %s2146_s28 }
 0x2e8   : > { %1149 = vrot.lane.b32.xlu1 %v1186_v18, %s2146_s28 }
 0x2eb   : > { %1236 = vrot.lane.b32.xlu0 %v1234_v23, %s2143_s16 }
 0x2ec   : > { %1130 = vrot.lane.b32.xlu1 %v1186_v18, %s2148_s7 }
 0x2ef   : > { %1176 = vrot.lane.b32.xlu0 %v1190_v22, %s2145_s26  ;;  %s240_s26 = scalar_lea.vmem [#allocation7], %s1967_s17  ;;  %s2078_s17 = scalar_lea.vmem %s2077_s22, 256 }
 0x2f0   : > { %1240 = vrot.lane.b32.xlu1 %v2041_v24, %s2143_s16  ;;  %v2639_v24 = vand.u32 4294901760, %v1285_v10  ;;  %s1890_s28 = sshll.u32 %s240_s26, 4  ;;  %s1891_s28 = int_to_ptr.vmem [resolvable:$true] %s1890_s28 }
 0x2f1   : > { %s2072_s11 = scalar_lea.vmem %s1891_s28, 128  ;;  %p2079_p3 = scmp.lt.s32.totalorder %s1891_s28, %s2077_s22 }
 0x2f2   : > { %v2660_v48 = vsub.f32 %v1285_v10, %v2639_v24  ;;  %p2073_p11 = scmp.ne.s32.totalorder %s1891_s28, %s2072_s11  ;;  %p2080_p5 = scmp.lt.s32.totalorder %s2078_s17, %s2072_s11 }
 0x2f3   : > { %1132 = vrot.lane.b32.xlu0 %v1190_v22, %s2148_s7  ;;  %s1888_s7 = scalar_lea.hbm %s2848_s5, %s1975_s25 }
 0x2f4   : > { %1255 = vrot.lane.b32.xlu1 %v1190_v22, %s2141_s29  ;;  %p2074_p13 = pnand %p2073_p11, %p2875_p12  ;;  %p2081_p8 = por %p2080_p5, %p2079_p3 }
 0x2f6   : > { %p2075_p1 = pneg %p2074_p13 }
 0x2f7   : > { %1095 = vrot.lane.b32.xlu0 %v1190_v22, %s2147_s8 }
 0x2f8   : > { %1097 = vrot.lane.b32.xlu1 %v1089_v27, %s2147_s8  ;;  %p2082_p10 = pnand %p2081_p8, %p2075_p1 }
 0x2fb   : > { %1117 = vrot.lane.b32.xlu0 %v2042_v28, %s2149_s9 }
 0x2fc   : > { %1115 = vrot.lane.b32.xlu1 %v1186_v18, %s2149_s9 }
 0x2ff   : > { %1281 = vperm.xlu0 %2034, %v1278_v29  }
 0x300   : > { %1113 = vrot.lane.b32.xlu1 %v1234_v23, %s2149_s9  ;;  %s1876_s9 = scalar_lea.sflag [#allocation6], %s2280_s13 }
 0x33d   : > { %v1258_v30 = vpop.permute.xlu0 %1257 }
 0x33e   : > { %v1196_v34 = vpop.permute.xlu1 %1195 }
 0x341   : > { %v1192_v36 = vpop.permute.xlu0 %1191 }
 0x342   : > { %v1221_v35 = vpop.permute.xlu1 %1220 }
 0x345   : > { %v1239_v38 = vpop.permute.xlu0 %1238 }
 0x346   : > { %v1154_v37 = vpop.permute.xlu1 %1153 }
 0x349   : > { %v1175_v41 = vpop.permute.xlu0 %1174 }
 0x34a   : > { %v1179_v40 = vpop.permute.xlu1 %1178 }
 0x34d   : > { %v1094_v44 = vpop.permute.xlu0 %1093 }
 0x34e   : > { %v1135_v42 = vpop.permute.xlu1 %1134 }
 0x351   : > { %v1194_v31 = vpop.permute.xlu0 %1193 }
 0x352   : > { %v1254_v25 = vpop.permute.xlu1 %1253  ;;  %v1197_v46 = vsel %vm404_vm8, %v1192_v36, %v1194_v31  ;;  %v1198_v49 = vsel %vm404_vm8, %v1194_v31, %v1196_v34 }
 0x353   : > { %v1201_v51 = vsel %vm2352_vm9, %v1197_v46, 0.0  ;;  %v1202_v57 = vsel %vm2343_vm7, %v1198_v49, 0.0 }
 0x354   : > { %v1205_v62 = vrot.slane %v1201_v51, 4  ;;  %v1206_v5 = vrot.slane %v1202_v57, 4 }
 0x355   : > { %v1219_v26 = vpop.permute.xlu0 %1218 }
 0x356   : > { %v1217_v20 = vpop.permute.xlu1 %1216  ;;  %1209 = vst [vmem:[#allocation3 + $0x48] sm:$0xf0] %v1205_v62  ;;  %1210 = vst [vmem:[#allocation3 + $0x28] sm:$0xf0] %v1206_v5  ;;  %v1223_v45 = vsel %vm430_vm10, %v1219_v26, %v1221_v35 }
 0x357   : > { %v1222_v32 = vsel %vm430_vm10, %v1217_v20, %v1219_v26  ;;  %v1227_v50 = vsel %vm2364_vm11, %v1223_v45, 0.0 }
 0x358   : > { %v1226_v47 = vsel %vm2381_vm14, %v1222_v32, 0.0  ;;  %1229 = vst [vmem:[#allocation3 + $0x20] sm:$0xf] %v1227_v50 }
 0x359   : > { %1228 = vst [vmem:[#allocation3 + $0x8] sm:$0xf] %v1226_v47  ;;  %v1152_v53 = vpop.permute.xlu0 %1151 }
 0x35a   : > { %v1150_v52 = vpop.permute.xlu1 %1149  ;;  %v1156_v55 = vsel %vm360_vm13, %v1152_v53, %v1154_v37 }
 0x35b   : > { %v1155_v54 = vsel %vm360_vm13, %v1150_v52, %v1152_v53  ;;  %v1160_v58 = vsel %vm2364_vm11, %v1156_v55, 0.0  ;;  %v1370_v53 = vand.u32 4294901760, %v2660_v48 }
 0x35c   : > { %v1159_v56 = vsel %vm2381_vm14, %v1155_v54, 0.0  ;;  %v1164_v60 = vrot.slane %v1160_v58, 4 }
 0x35d   : > { %v1163_v59 = vrot.slane %v1159_v56, 4  ;;  %v1237_v63 = vpop.permute.xlu0 %1236 }
 0x35e   : > { %v1131_v43 = vpop.permute.xlu1 %1130  ;;  %1168 = vst [vmem:[#allocation3 + $0x10] sm:$0xf0] %v1164_v60  ;;  %v1242_v1 = vsel %vm451_vm15, %v1237_v63, %v1239_v38 }
 0x35f   : > { %1167 = vst [vmem:[#allocation3 + $0x18] sm:$0xf0] %v1163_v59  ;;  %1246 = vst [vmem:[#allocation3 + $0x8] sm:$0xf0] %v1242_v1 }
 0x361   : > { %v1177_v4 = vpop.permute.xlu0 %1176 }
 0x362   : > { %v1241_v2 = vpop.permute.xlu1 %1240  ;;  %v1180_v8 = vsel %vm386_vm1, %v1175_v41, %v1177_v4  ;;  %v1181_v9 = vsel %vm386_vm1, %v1177_v4, %v1179_v40  ;;  %v1371_v4 = vsub.f32 %v2660_v48, %v1370_v53 }
 0x363   : > { %v1243_v7 = vsel %vm451_vm15, %v1239_v38, %v1241_v2  ;;  %1184 = vst [vmem:[#allocation3 + $0x48] sm:$0xf] %v1180_v8  ;;  %1185 = vst [vmem:[#allocation3 + $0x28] sm:$0xf] %v1181_v9 }
 0x364   : > { %1247 = vst [vmem:[#allocation3 + $0x20] sm:$0xf0] %v1243_v7 }
 0x365   : > { %v1133_v12 = vpop.permute.xlu0 %1132 }
 0x366   : > { %v1256_v11 = vpop.permute.xlu1 %1255  ;;  %v1136_v15 = vsel %vm2871_vm0, %v1131_v43, %v1133_v12  ;;  %v1137_v16 = vsel %vm2872_vm4, %v1133_v12, %v1135_v42  ;;  %v1274_v23 = vld [vmem:[#allocation3 + $0x8] sm:$0xff] }
 0x367   : > { %v1259_v13 = vsel %vm469_vm6, %v1254_v25, %v1256_v11  ;;  %v1260_v14 = vsel %vm469_vm6, %v1256_v11, %v1258_v30  ;;  %v1140_v19 = vsel %vm2352_vm9, %v1136_v15, 0.0  ;;  %v1141_v21 = vsel %vm2343_vm7, %v1137_v16, 0.0  ;;  %vm2874_vm6 = vmmov %vm2873_vm5 }
 0x368   : > { %v1263_v17 = vsel %vm2352_vm9, %v1259_v13, 0.0  ;;  %v1264_v18 = vsel %vm2343_vm7, %v1260_v14, 0.0  ;;  %1142 = vst [vmem:[#allocation3 + $0x18] sm:$0xf] %v1140_v19  ;;  %1143 = vst [vmem:[#allocation3 + $0x10] sm:$0xf] %v1141_v21 }
 0x369   : > { %1265 = vst [vmem:[#allocation3 + $0x40] sm:$0xf] %v1263_v17  ;;  %1266 = vst [vmem:[#allocation3 + $0x38] sm:$0xf] %v1264_v18  ;;  %v1096_v22 = vpop.permute.xlu0 %1095  ;;  %v2649_v36 = vand.u32 4294901760, %v1274_v23  ;;  %v1372_v18 = vand.u32 4294901760, %v1371_v4 }
 0x36a   : > { %v1098_v3 = vpop.permute.xlu1 %1097  ;;  %v1099_v27 = vsel %vm301_vm12, %v1094_v44, %v1096_v22  ;;  %v1273_v30 = vld [vmem:[#allocation3 + $0x28] sm:$0xff] }
 0x36b   : > { %v1100_v28 = vsel %vm301_vm12, %v1096_v22, %v1098_v3  ;;  %v1275_v29 = vld [vmem:[#allocation3 + $0x20] sm:$0xff]  ;;  %v1103_v39 = vsel %vm2381_vm14, %v1099_v27, 0.0  ;;  %v1272_v35 = vld [vmem:[#allocation3 + $0x48] sm:$0xff]  ;;  %v2651_v40 = vand.u32 4294901760, %v1273_v30  ;;  %v2665_v51 = vsub.f32 %v1274_v23, %v2649_v36 }
 0x36c   : > { %v1104_v33 = vsel %vm2364_vm11, %v1100_v28, 0.0  ;;  %v2647_v34 = vand.u32 4294901760, %v1275_v29  ;;  %1105 = vst [vmem:[#allocation3 + $0x30] sm:$0xf] %v1103_v39  ;;  %v2654_v42 = vand.u32 4294901760, %v1272_v35 }
 0x36d   : > { %1106 = vst [vmem:[#allocation3] sm:$0xf] %v1104_v33  ;;  %v1118_v38 = vpop.permute.xlu0 %1117  ;;  %v2676_v45 = vsub.f32 %v1273_v30, %v2651_v40  ;;  %v1421_v59 = vand.u32 4294901760, %v2665_v51 }
 0x36e   : > { %v1116_v37 = vpop.permute.xlu1 %1115  ;;  %v2657_v61 = vsub.f32 %v1275_v29, %v2647_v34  ;;  %v2680_v50 = vsub.f32 %v1272_v35, %v2654_v42 }
 0x36f   : > { %v1120_v41 = vsel %vm322_vm2, %v1116_v37, %v1118_v38  ;;  %v1271_v31 = vld [vmem:[#allocation3 + $0x10] sm:$0xff]  ;;  %v1270_v62 = vld [vmem:[#allocation3 + $0x18] sm:$0xff]  ;;  %v1427_v63 = vand.u32 4294901760, %v2676_v45  ;;  %v1422_v11 = vsub.f32 %v2665_v51, %v1421_v59 }
 0x370   : > { %1124 = vst [vmem:[#allocation3] sm:$0xf0] %v1120_v41  ;;  %v1277_v44 = vld [vmem:[#allocation3 + $0x38] sm:$0xf]  ;;  %v1276_v25 = vld [vmem:[#allocation3 + $0x40] sm:$0xf] }
 0x371   : > { %v1291_v46 = vsel %vm2873_vm5, %v1277_v44, 0  ;;  %v1288_v49 = vsel %vm2874_vm6, %v1276_v25, 0  ;;  %v2667_v57 = vand.u32 4294901760, %v1271_v31  ;;  %v2673_v32 = vand.u32 4294901760, %v1270_v62 }
 0x372   : > { %v1114_v5 = vpop.permute.xlu1 %1113  ;;  %v2669_v20 = vand.u32 4294901760, %v1291_v46  ;;  %v2671_v26 = vand.u32 4294901760, %v1288_v49  ;;  %v1415_v52 = vand.u32 4294901760, %v2657_v61  ;;  %v1433_v6 = vand.u32 4294901760, %v2680_v50 }
 0x373   : > { %v1119_v47 = vsel %vm322_vm2, %v1114_v5, %v1116_v37  ;;  %v2692_v56 = vsub.f32 %v1271_v31, %v2667_v57  ;;  %v2696_v58 = vsub.f32 %v1270_v62, %v2673_v32  ;;  %v1428_v15 = vsub.f32 %v2676_v45, %v1427_v63 }
 0x374   : > { %1123 = vst [vmem:[#allocation3 + $0x30] sm:$0xf0] %v1119_v47  ;;  %1316 = vmatprep.subr.mxu0 %v2669_v20  ;;  %v2686_v54 = vsub.f32 %v1288_v49, %v2671_v26  ;;  %v2689_v55 = vsub.f32 %v1291_v46, %v2669_v20  ;;  %v1416_v2 = vsub.f32 %v2657_v61, %v1415_v52  ;;  %v1423_v27 = vand.u32 4294901760, %v1422_v11  ;;  %v1862_v47 = vld [vmem:[%s2286_s15] sm:$0xff] }
 0x375   : > { %1318 = vmatpush1.msra.mxu0 %v2671_v26  ;;  %v1439_v10 = vand.u32 4294901760, %v2692_v56  ;;  %v1445_v12 = vand.u32 4294901760, %v2696_v58  ;;  %v1434_v19 = vsub.f32 %v2680_v50, %v1433_v6  ;;  %v1429_v30 = vand.u32 4294901760, %v1428_v15 }
 0x376   : > { %1320 = vmatprep.subr.mxu0 %v2647_v34  ;;  %v1403_v60 = vand.u32 4294901760, %v2689_v55  ;;  %v1409_v43 = vand.u32 4294901760, %v2686_v54  ;;  %v1417_v3 = vand.u32 4294901760, %v1416_v2 }
 0x377   : > { %1322 = vmatpush1.msra.mxu0 %v2649_v36  ;;  %v1269_v1 = vld [vmem:[#allocation3] sm:$0xff]  ;;  %v1440_v22 = vsub.f32 %v2692_v56, %v1439_v10  ;;  %v1446_v28 = vsub.f32 %v2696_v58, %v1445_v12  ;;  %v1435_v33 = vand.u32 4294901760, %v1434_v19 }
 0x378   : > { %1324 = vmatprep.subr.mxu0 %v2651_v40  ;;  %v2712_v7 = vand.u32 4294901760, %v1269_v1  ;;  %v1404_v8 = vsub.f32 %v2689_v55, %v1403_v60  ;;  %v1410_v9 = vsub.f32 %v2686_v54, %v1409_v43 }
 0x379   : > { %1326 = vmatpush1.msra.mxu0 %v2654_v42  ;;  %v1441_v35 = vand.u32 4294901760, %v1440_v22  ;;  %v1447_v38 = vand.u32 4294901760, %v1446_v28 }
 0x37a   : > { %1328 = vmatprep.subr.mxu0 %v2667_v57  ;;  %v1405_v13 = vand.u32 4294901760, %v1404_v8  ;;  %v1411_v14 = vand.u32 4294901760, %v1410_v9  ;;  %v2731_v16 = vsub.f32 %v1269_v1, %v2712_v7 }
 0x37b   : > { %1330 = vmatpush1.msra.mxu0 %v2673_v32  ;;  %v1268_v17 = vld [vmem:[#allocation3 + $0x30] sm:$0xff] }
 0x37c   : > { %1332 = vmatprep.subr.mxu0 %v2712_v7  ;;  %1406 = vmatprep.subr.mxu1 %v1405_v13  ;;  %v2738_v21 = vand.u32 4294901760, %v1268_v17  ;;  %v1451_v23 = vand.u32 4294901760, %v2731_v16 }
 0x37d   : > { %1412 = vmatpush1.msra.mxu1 %v1411_v14 }
 0x37e   : > { %1334 = vmatpush1.msra.mxu0 %v2738_v21  ;;  %v1456_v29 = vsub.f32 %v1268_v17, %v2738_v21  ;;  %1418 = vmatprep.subr.mxu1 %v1417_v3  ;;  %v1452_v39 = vsub.f32 %v2731_v16, %v1451_v23 }
 0x37f   : > { %1373 = vmatmul.mubr.f32.vlgmr.msra.gmra.mxu0 %v1372_v18  ;;  %1424 = vmatpush1.msra.mxu1 %v1423_v27 }
 0x380   : > { %1525 = vmatprep.subr.mxu0 %v2689_v55  ;;  %1430 = vmatprep.subr.mxu1 %v1429_v30  ;;  %v1457_v37 = vand.u32 4294901760, %v1456_v29  ;;  %v1453_v41 = vand.u32 4294901760, %v1452_v39  ;;  %v1864_v55 = vcombine.high %v1862_v47, %v1862_v47 }
 0x381   : > { %1528 = vmatpush1.msra.mxu0 %v2686_v54  ;;  %1436 = vmatpush1.msra.mxu1 %v1435_v33 }
 0x382   : > { %1531 = vmatprep.subr.mxu0 %v2657_v61  ;;  %1442 = vmatprep.subr.mxu1 %v1441_v35  ;;  %v1458_v44 = vsub.f32 %v1456_v29, %v1457_v37 }
 0x383   : > { %1534 = vmatpush1.msra.mxu0 %v2665_v51  ;;  %1448 = vmatpush1.msra.mxu1 %v1447_v38 }
 0x384   : > { %1537 = vmatprep.subr.mxu0 %v2676_v45  ;;  %1454 = vmatprep.subr.mxu1 %v1453_v41  ;;  %v1459_v25 = vand.u32 4294901760, %v1458_v44 }
 0x385   : > { %1540 = vmatpush1.msra.mxu0 %v2680_v50  ;;  %1585 = vmatprep.mubr.f32.mxu0 %v2139_v0 }
 0x386   : > { %1543 = vmatprep.subr.mxu0 %v2692_v56  ;;  %1460 = vmatpush1.msra.mxu1 %v1459_v25 }
 0x387   : > { %1546 = vmatpush1.msra.mxu0 %v2696_v58  ;;  %1495 = vmatmul.mubr.f32.vlgmr.msra.gmra.mxu1 %v2639_v24 }
 0x388   : > { %1549 = vmatprep.subr.mxu0 %v2731_v16  ;;  %1617 = vmatprep.subr.mxu1 %v2669_v20 }
 0x389   : > { %1552 = vmatpush1.msra.mxu0 %v1456_v29  ;;  %1619 = vmatpush1.msra.mxu1 %v2671_v26 }
 0x38a   : > { %1588 = vmatmul.mubr.f32.vlgmr.msra.gmra.mxu0 %v2660_v48  ;;  %1621 = vmatprep.subr.mxu1 %v2647_v34  ;;  %v1282_v48 = vpop.permute.xlu0 %1281 }
 0x38b   : > { %1703 = vmatprep.subr.mxu0 %v1403_v60  ;;  %1623 = vmatpush1.msra.mxu1 %v2649_v36 }
 0x38c   : > { %1707 = vmatpush1.msra.mxu0 %v1409_v43  ;;  %1625 = vmatprep.subr.mxu1 %v2651_v40 }
 0x38d   : > { %1711 = vmatprep.subr.mxu0 %v1415_v52  ;;  %1627 = vmatpush1.msra.mxu1 %v2654_v42 }
 0x38e   : > { %1715 = vmatpush1.msra.mxu0 %v1421_v59  ;;  %1629 = vmatprep.subr.mxu1 %v2667_v57 }
 0x38f   : > { %1719 = vmatprep.subr.mxu0 %v1427_v63  ;;  %1631 = vmatpush1.msra.mxu1 %v2673_v32 }
 0x390   : > { %1723 = vmatpush1.msra.mxu0 %v1433_v6  ;;  %1633 = vmatprep.subr.mxu1 %v2712_v7 }
 0x391   : > { %1727 = vmatprep.subr.mxu0 %v1439_v10  ;;  %1635 = vmatpush1.msra.mxu1 %v2738_v21 }
 0x392   : > { %1668 = vmatprep.mubr.f32.mxu1 %v2139_v0  ;;  %1731 = vmatpush1.msra.mxu0 %v1445_v12 }
 0x393   : > { %1672 = vmatmul.mubr.f32.vlgmr.msra.gmra.mxu1 %v1370_v53  ;;  %1735 = vmatprep.subr.mxu0 %v1451_v23 }
 0x394   : > { %1803 = vmatprep.subr.mxu1 %v2669_v20  ;;  %1739 = vmatpush1.msra.mxu0 %v1457_v37 }
 0x395   : > { %1772 = vmatprep.mubr.f32.mxu0 %v2139_v0  ;;  %1805 = vmatpush1.msra.mxu1 %v2671_v26 }
 0x396   : > { %1774 = vmatmul.mubr.f32.vlgmr.msra.gmra.mxu0 %v2639_v24  ;;  %1807 = vmatprep.subr.mxu1 %v2647_v34 }
 0x397   : > { %1809 = vmatpush1.msra.mxu1 %v2649_v36  ;;  %1854 = vmatprep.mubr.f32.mxu1 %v2139_v0 }
 0x398   : > { %1811 = vmatprep.subr.mxu1 %v2651_v40 }
 0x399   : > { %1813 = vmatpush1.msra.mxu1 %v2654_v42 }
 0x39a   : > { %1815 = vmatprep.subr.mxu1 %v2667_v57 }
 0x39b   : > { %1817 = vmatpush1.msra.mxu1 %v2673_v32 }
 0x39c   : > { %1819 = vmatprep.subr.mxu1 %v2712_v7 }
 0x39d   : > { %1821 = vmatpush1.msra.mxu1 %v2738_v21 }
 0x39e   : > { %1856 = vmatmul.mubr.f32.vlgmr.msra.gmra.mxu1 %v2639_v24 }
 0x43f   : > { %v1374_v61 = vpop.f32.mrf.mxu0 }
 0x440   : > { %v1375_v0 = vadd.f32 %v1374_v61, %v1282_v48 }
 0x441   : > { %v1376_v36 = vpop.f32.mrf.mxu0 }
 0x442   : > { %v1377_v46 = vadd.f32 %v1376_v36, %v1282_v48 }
 0x447   : > { %v1496_v34 = vpop.f32.mrf.mxu1 }
 0x448   : > { %v1497_v42 = vadd.f32 %v1496_v34, %v1375_v0 }
 0x449   : > { %v1498_v31 = vpop.f32.mrf.mxu1 }
 0x44a   : > { %v1589_v40 = vpop.f32.mrf.mxu0  ;;  %v1499_v51 = vadd.f32 %v1498_v31, %v1377_v46 }
 0x44b   : > { %v1590_v62 = vadd.f32 %v1589_v40, %v1497_v42 }
 0x44c   : > { %v1591_v57 = vpop.f32.mrf.mxu0 }
 0x44d   : > { %v1592_v26 = vadd.f32 %v1591_v57, %v1499_v51 }
 0x453   : > { %v1673_v49 = vpop.f32.mrf.mxu1 }
 0x454   : > { %v1674_v24 = vadd.f32 %v1673_v49, %v1590_v62 }
 0x455   : > { %v1675_v5 = vpop.f32.mrf.mxu1 }
 0x456   : > { %v1775_v20 = vpop.f32.mrf.mxu0  ;;  %v1676_v32 = vadd.f32 %v1675_v5, %v1592_v26 }
 0x457   : > { %v1776_v50 = vadd.f32 %v1775_v20, %v1674_v24 }
 0x458   : > { %v1777_v45 = vpop.f32.mrf.mxu0 }
 0x459   : > { %v1778_v53 = vadd.f32 %v1777_v45, %v1676_v32 }
 0x45e   : > { %v1857_v52 = vpop.f32.mrf.mxu1 }
 0x45f   : > { %v1858_v54 = vadd.f32 %v1857_v52, %v1776_v50 }
 0x460   : > { %v1859_v56 = vpop.f32.mrf.mxu1 }
 0x461   : > { %v1866_v58 = vadd.f32 %v1862_v47, %v1858_v54  ;;  %v1860_v59 = vadd.f32 %v1859_v56, %v1778_v53 }
 0x463   : > { %v1867_v60 = vadd.f32 %v1864_v55, %v1860_v59  ;;  %v1868_v43 = vmax.f32 %v1866_v58, 0.0 }
 0x465   : > { %v1869_v63 = vmax.f32 %v1867_v60, 0.0 }
 0x467   : > { %v1872_v1 = vcombine.low %v1868_v43, %v1869_v63 }
 0x469   : > { %1874 = vst [vmem:[%s240_s26] sm:$0xff] %v1872_v1 }
 0x46a   : > { %2085 = shalt.err (!%p2082_p10)
}
 0x46b   : > { %s2086_s10 = scalar_lea.hbm %s1888_s7, 128  ;;  %s2090_s14 = scalar_lea.hbm %s2848_s5, 256 }
 0x46c   : > { %p2087_p2 = scmp.ne.s32.totalorder %s1888_s7, %s2086_s10  ;;  %p2091_p7 = scmp.lt.s32.totalorder %s1888_s7, %s2848_s5 }
 0x46d   : > { %p2092_p0 = scmp.lt.s32.totalorder %s2090_s14, %s2086_s10 }
 0x46e   : > { %p2088_p4 = pnand %p2087_p2, %p2875_p12 }
 0x46f   : > { %p2093_p6 = por %p2092_p0, %p2091_p7 }
 0x470   : > { %p2089_p9 = pneg %p2088_p4 }
 0x472   : > { %p2094_p11 = pnand %p2093_p6, %p2089_p9 }
 0x474   : > { %2097 = shalt.err (!%p2094_p11)
}
 0x475   : > { %1978 = dma.vmem_to_hbm [thread:$0]  (%p2875_p12), %s1891_s28, 128, %s1888_s7, %s1876_s9  }
 0x476 PF: > { %s1902_s25 = sand.u32 1, %s2124_s18   ;;  %p2876_p13 = scmp.ne.s32.totalorder %s2856_s6, 0 }
 0x477   : > { %p2877_p1 = scmp.ge.s32.totalorder %s2136_s21, 2  ;;  %s1903_s26 = scalar_lea.sflag [#allocation6], %s1902_s25 }
 0x479   : > { %p1985_p3 = pnand %p2877_p1, %p2876_p13 }
 0x47b   : > { %p1986_p5 = pneg %p1985_p3 }
 0x47d   : > { %2119 = dma.done.wait (%p1986_p5), %s1903_s26, 128  }
 0x47e   : > { %2121 = vsyncadd (%p1986_p5), %s1903_s26, 4294967168  ;;  %p18_p8 = scmp.ge.s32.totalorder %s2207_s24, 4   ;;  %s2878_s18 = smov %s2128_s19 }
 0x47f   : > { %s2879_s19 = smov %s2132_s20  ;;  %s2880_s20 = smov %s2219_s27 }
 0x480   : > { %s2881_s21 = smov %s2207_s24  ;;  %20 = sbr.rel (!%p18_p8) target bundleno = 5 (0x5), region = 85 }
 0x485   :  { %1908 = vsyncpa [#allocation5], 1 }
 0x486   :  { %1910 = vsyncpa [#allocation5 + $0x1], 1 }
 0x487   :  { %1911 = vsyncpa [#allocation6], 1 }
 0x488   :  { %1913 = vsyncpa [#allocation6 + $0x1], 1 }

</bundles_post_ra>
